<compile_context>
chip_gen: v7x
topology: tpu7x:2x2x1
jax: 0.10.0
libtpu: 0.0.40
codegen_flags: <defaults>
</compile_context>

<pallas_src>
import math
import functools

import jax
import jax.numpy as jnp
import numpy as np
from jax.experimental import pallas as pl
from jax.experimental.pallas import tpu as pltpu


# ----------------------------------------------------------------------------
# Fused kernel: projections + batched-head attention + output projection
# ----------------------------------------------------------------------------
def _fused_attention_layer_kernel(q_in_ref, k_in_ref, v_in_ref,
                                  wq_ref, bq_ref, wk_ref, bk_ref,
                                  wv_ref, bv_ref, wo_ref, bo_ref,
                                  o_ref, q_scr, k_scr, v_scr,
                                  *, n_heads, d_keys, d_values, scale):
    f32 = jnp.float32
    mxu = jnp.bfloat16          # bf16 operands + f32 accumulation = full MXU rate
    H, E, Dv = n_heads, d_keys, d_values

    # ---- K/V projection + head-major relayout: once per batch element.
    #      (K/V BlockSpecs are constant along the q-tile axis, so their DMA is
    #      already amortized; this pl.when amortizes the *compute* too.)
    @pl.when(pl.program_id(1) == 0)
    def _project_kv():
        k = jnp.dot(k_in_ref[...].astype(mxu), wk_ref[...].astype(mxu),
                    preferred_element_type=f32) + bk_ref[...].astype(f32)
        v = jnp.dot(v_in_ref[...].astype(mxu), wv_ref[...].astype(mxu),
                    preferred_element_type=f32) + bv_ref[...].astype(f32)
        # One-time lane-slice relayout into head-major (H, S, E)/(H, S, Dv)
        # scratch so every later matmul is a single batched MXU op.
        for h in range(H):
            k_scr[h] = k[:, h * E:(h + 1) * E].astype(mxu)
            v_scr[h] = v[:, h * Dv:(h + 1) * Dv].astype(mxu)

    # ---- Q projection for this (TQ, d_model) tile; 1/sqrt(E) folded once on
    #      the full-width f32 slab (full 128-lane vregs, no per-head scaling).
    q = jnp.dot(q_in_ref[...].astype(mxu), wq_ref[...].astype(mxu),
                preferred_element_type=f32) + bq_ref[...].astype(f32)
    q = q * scale
    for h in range(H):
        q_scr[h] = q[:, h * E:(h + 1) * E].astype(mxu)      # (H, TQ, E)

    # ---- batched per-head attention: heads are the leading batch axis of one
    #      dot_general; softmax kept in f32 (safe on all generations, incl. v5e).
    # TODO(synk): for very long S add a KV grid axis with an online-softmax
    #             (flash) accumulator so the (H, TQ, S) score block stays
    #             bounded under v7x's 64 MiB VMEM.
    s = jnp.einsum('hqe,hke->hqk', q_scr[...], k_scr[...],
                   preferred_element_type=f32)               # (H, TQ, S)
    s = s - jnp.max(s, axis=-1, keepdims=True)
    p = jnp.exp(s)
    p = p * pl.reciprocal(jnp.sum(p, axis=-1, keepdims=True), approx=True)
    o = jnp.einsum('hqk,hkd->hqd', p.astype(mxu), v_scr[...],
                   preferred_element_type=f32)               # (H, TQ, Dv)

    # ---- merge heads back to a lane-dense (TQ, H*Dv) slab + output projection.
    attn = jnp.concatenate([o[h] for h in range(H)], axis=-1).astype(mxu)
    out = (jnp.dot(attn, wo_ref[...].astype(mxu), preferred_element_type=f32)
           + bo_ref[...].astype(f32))
    o_ref[...] = out.astype(o_ref.dtype)


# ----------------------------------------------------------------------------
# Tile / VMEM sizing helpers
# ----------------------------------------------------------------------------
def _pick_tq(L, max_tq=None):
    """Largest query tile <= cap; prefers divisors of L (multiples of 8)."""
    cap = max_tq if max_tq is not None else 256
    if L <= cap:
        return L
    best = None
    for t in range(8, cap + 1, 8):
        if L % t == 0:
            best = t
    # Non-divisible L: Pallas pads/clips the tail block; all row-local math.
    return best if best is not None else cap


def _vmem_limit_bytes(TQ, S, d_model, dqk, dv, n_heads, in_bytes):
    """Rough per-step working-set estimate with headroom, capped for v7x."""
    f32b, bf16b = 4, 2
    io = 2 * ((TQ + 2 * S) * d_model + TQ * d_model) * in_bytes        # dbl-buffered tiles
    wts = 2 * (d_model * (2 * dqk + 2 * dv) + 2 * dqk + dv + d_model) * in_bytes
    scr = (TQ * dqk + S * (dqk + dv)) * bf16b                          # head-major q/k/v
    act = (TQ * dqk + S * (dqk + dv) + TQ * dv + TQ * d_model) * f32b  # f32 projections/out
    scores = n_heads * TQ * S * (f32b + bf16b) * 2                     # s, p (+ headroom)
    est = io + wts + scr + act + scores
    # Cap at 64 MiB so the same setting is valid on v7x (64 MiB physical VMEM).
    return int(min(64 * 1024 * 1024, max(2 * est, 32 * 1024 * 1024)))


# ----------------------------------------------------------------------------
# AttentionLayer forward: one pallas_call, grid over (batch, query tiles)
# ----------------------------------------------------------------------------
def attention_layer_forward(queries, keys, values, attn_mask, params, n_heads,
                            max_tq=None):
    # attn_mask ignored: inner attention is FullAttention(mask_flag=False).
    del attn_mask
    B, L, d_model = queries.shape
    _, S, _ = keys.shape
    H = n_heads
    d_keys = params["wq"].shape[1] // H
    d_values = params["wv"].shape[1] // H
    dqk, dv = H * d_keys, H * d_values
    scale = 1.0 / math.sqrt(d_keys)

    TQ = _pick_tq(L, max_tq)
    n_q_tiles = pl.cdiv(L, TQ)

    kernel = functools.partial(
        _fused_attention_layer_kernel,
        n_heads=H, d_keys=d_keys, d_values=d_values, scale=scale)

    vmem_limit = _vmem_limit_bytes(TQ, S, d_model, dqk, dv, H,
                                   queries.dtype.itemsize)

    # TODO(synk): when queries is keys is values (self-attention call sites),
    #             fuse the three projections into one (d_model, 2*dqk+dv)
    #             matmul and drop the duplicate K/V input DMAs.
    return pl.pallas_call(
        kernel,
        out_shape=jax.ShapeDtypeStruct((B, L, d_model), queries.dtype),
        grid=(B, n_q_tiles),
        in_specs=[
            pl.BlockSpec((None, TQ, d_model), lambda b, i: (b, i, 0)),
            pl.BlockSpec((None, S, d_model), lambda b, i: (b, 0, 0)),
            pl.BlockSpec((None, S, d_model), lambda b, i: (b, 0, 0)),
            # Weights/biases: constant block index -> DMA'd once, VMEM-resident.
            # TODO(synk): pipeline_mode=pl.Buffered(1) to drop their second
            #             pipeline buffer once that path is exercised.
            pl.BlockSpec((d_model, dqk), lambda b, i: (0, 0)),
            pl.BlockSpec((1, dqk), lambda b, i: (0, 0)),
            pl.BlockSpec((d_model, dqk), lambda b, i: (0, 0)),
            pl.BlockSpec((1, dqk), lambda b, i: (0, 0)),
            pl.BlockSpec((d_model, dv), lambda b, i: (0, 0)),
            pl.BlockSpec((1, dv), lambda b, i: (0, 0)),
            pl.BlockSpec((dv, d_model), lambda b, i: (0, 0)),
            pl.BlockSpec((1, d_model), lambda b, i: (0, 0)),
        ],
        out_specs=pl.BlockSpec((None, TQ, d_model), lambda b, i: (b, i, 0)),
        scratch_shapes=[
            pltpu.VMEM((H, TQ, d_keys), jnp.bfloat16),    # q head-major
            pltpu.VMEM((H, S, d_keys), jnp.bfloat16),     # k head-major (per batch)
            pltpu.VMEM((H, S, d_values), jnp.bfloat16),   # v head-major (per batch)
        ],
        compiler_params=pltpu.CompilerParams(
            dimension_semantics=("parallel", "arbitrary"),
            vmem_limit_bytes=vmem_limit),
    )(queries, keys, values,
      params["wq"], params["bq"], params["wk"], params["bk"],
      params["wv"], params["bv"], params["wo"], params["bo"])


# ----------------------------------------------------------------------------
# Pure-JAX reference (for correctness check)
# ----------------------------------------------------------------------------
def reference_forward(queries, keys, values, params, n_heads):
    B, L, _ = queries.shape
    _, S, _ = keys.shape
    H = n_heads
    d_keys = params["wq"].shape[1] // H
    d_values = params["wv"].shape[1] // H
    q = queries @ params["wq"] + params["bq"]
    k = keys @ params["wk"] + params["bk"]
    v = values @ params["wv"] + params["bv"]
    q = q.reshape(B, L, H, d_keys)
    k = k.reshape(B, S, H, d_keys)
    v = v.reshape(B, S, H, d_values)
    scale = 1.0 / math.sqrt(d_keys)
    scores = jnp.einsum("blhe,bshe->bhls", q, k) * scale
    A = jax.nn.softmax(scores, axis=-1)
    out = jnp.einsum("bhls,bshd->blhd", A, v).reshape(B, L, H * d_values)
    return out @ params["wo"] + params["bo"]


# ----------------------------------------------------------------------------
# Deterministic parameter init (shapes from nn.Linear in __init__)
# ----------------------------------------------------------------------------
def init_params(key, d_model, n_heads, d_keys=None, d_values=None, dtype=jnp.float32):
    d_keys = d_keys or d_model // n_heads
    d_values = d_values or d_model // n_heads
    ks = jax.random.split(key, 8)

    def lin(kw, kb, d_in, d_out):
        bound = 1.0 / math.sqrt(d_in)
        w = jax.random.uniform(kw, (d_in, d_out), dtype, -bound, bound)
        # biases stored pre-reshaped to (1, d_out) so no per-call reshape ops
        b = jax.random.uniform(kb, (1, d_out), dtype, -bound, bound)
        return w, b

    wq, bq = lin(ks[0], ks[1], d_model, d_keys * n_heads)
    wk, bk = lin(ks[2], ks[3], d_model, d_keys * n_heads)
    wv, bv = lin(ks[4], ks[5], d_model, d_values * n_heads)
    wo, bo = lin(ks[6], ks[7], d_values * n_heads, d_model)
    return dict(wq=wq, bq=bq, wk=wk, bk=bk, wv=wv, bv=bv, wo=wo, bo=bo)


if __name__ == "__main__":
    # L=16 with max_tq=8 -> 2 query tiles per batch, exercising the pipelined
    # q-tile axis and the once-per-batch K/V projection cache.  L != S also
    # exercises the cross-attention path.
    B, L, S = 2, 16, 8
    d_model, n_heads = 32, 4

    key = jax.random.PRNGKey(0)
    k_params, k_q, k_k, k_v = jax.random.split(key, 4)
    params = init_params(k_params, d_model, n_heads)

    queries = jax.random.normal(k_q, (B, L, d_model), jnp.float32)
    keys = jax.random.normal(k_k, (B, S, d_model), jnp.float32)
    values = jax.random.normal(k_v, (B, S, d_model), jnp.float32)

    out = attention_layer_forward(queries, keys, values, None, params, n_heads,
                                  max_tq=8)
    out = jax.block_until_ready(out)

    ref = reference_forward(queries, keys, values, params, n_heads)
    assert out.shape == (B, L, d_model)
    # bf16 MXU operands (f32 accumulation) + approx (EUP) softmax reciprocal
    # -> small, bounded deviation from the pure-f32 reference.
    np.testing.assert_allclose(np.asarray(out), np.asarray(ref),
                               rtol=3e-2, atol=3e-2)

    print("KERNEL_OK")
</pallas_src>

<mosaic_0001>
module attributes {stable_mosaic.version = 11 : i64} {
  func.func @_fused_attention_layer_kernel(%arg0: i32, %arg1: i32, %arg2: memref<1x8x32xf32, #tpu.memory_space<vmem>>, %arg3: memref<1x8x32xf32, #tpu.memory_space<vmem>>, %arg4: memref<1x8x32xf32, #tpu.memory_space<vmem>>, %arg5: memref<32x32xf32, #tpu.memory_space<vmem>>, %arg6: memref<1x32xf32, #tpu.memory_space<vmem>>, %arg7: memref<32x32xf32, #tpu.memory_space<vmem>>, %arg8: memref<1x32xf32, #tpu.memory_space<vmem>>, %arg9: memref<32x32xf32, #tpu.memory_space<vmem>>, %arg10: memref<1x32xf32, #tpu.memory_space<vmem>>, %arg11: memref<32x32xf32, #tpu.memory_space<vmem>>, %arg12: memref<1x32xf32, #tpu.memory_space<vmem>>, %arg13: memref<1x8x32xf32, #tpu.memory_space<vmem>>, %arg14: memref<4x8x8xbf16, #tpu.memory_space<vmem>>, %arg15: memref<4x8x8xbf16, #tpu.memory_space<vmem>>, %arg16: memref<4x8x8xbf16, #tpu.memory_space<vmem>>) attributes {dimension_semantics = [#tpu.dimension_semantics<parallel>, #tpu.dimension_semantics<arbitrary>], iteration_bounds = array<i64: 2, 2>, scalar_prefetch = 0 : i64, scratch_operands = 3 : i64, tpu.core_type = #tpu.core_type<tc>, window_params = [{transform_indices = @transform_0, window_bounds = array<i64: 1, 8, 32>}, {transform_indices = @transform_1, window_bounds = array<i64: 1, 8, 32>}, {transform_indices = @transform_2, window_bounds = array<i64: 1, 8, 32>}, {pipeline_mode = #tpu.pipeline_mode<synchronous>, transform_indices = @transform_3, window_bounds = array<i64: 32, 32>}, {pipeline_mode = #tpu.pipeline_mode<synchronous>, transform_indices = @transform_4, window_bounds = array<i64: 1, 32>}, {pipeline_mode = #tpu.pipeline_mode<synchronous>, transform_indices = @transform_5, window_bounds = array<i64: 32, 32>}, {pipeline_mode = #tpu.pipeline_mode<synchronous>, transform_indices = @transform_6, window_bounds = array<i64: 1, 32>}, {pipeline_mode = #tpu.pipeline_mode<synchronous>, transform_indices = @transform_7, window_bounds = array<i64: 32, 32>}, {pipeline_mode = #tpu.pipeline_mode<synchronous>, transform_indices = @transform_8, window_bounds = array<i64: 1, 32>}, {pipeline_mode = #tpu.pipeline_mode<synchronous>, transform_indices = @transform_9, window_bounds = array<i64: 32, 32>}, {pipeline_mode = #tpu.pipeline_mode<synchronous>, transform_indices = @transform_10, window_bounds = array<i64: 1, 32>}, {transform_indices = @transform_11, window_bounds = array<i64: 1, 8, 32>}]} {
    %c0_i32 = arith.constant 0 : i32
    %0 = arith.cmpi eq, %arg1, %c0_i32 : i32
    %1 = arith.extui %0 : i1 to i32
    %c0_i32_0 = arith.constant 0 : i32
    %2 = arith.cmpi ne, %1, %c0_i32_0 : i32
    scf.if %2 {
      %c0_38 = arith.constant 0 : index
      %c0_39 = arith.constant 0 : index
      %c0_40 = arith.constant 0 : index
      %69 = vector.load %arg3[%c0_38, %c0_39, %c0_40] : memref<1x8x32xf32, #tpu.memory_space<vmem>>, vector<1x8x32xf32>
      %70 = vector.shape_cast %69 : vector<1x8x32xf32> to vector<8x32xf32>
      %71 = arith.truncf %70 : vector<8x32xf32> to vector<8x32xbf16>
      %c0_41 = arith.constant 0 : index
      %c0_42 = arith.constant 0 : index
      %72 = vector.load %arg7[%c0_41, %c0_42] : memref<32x32xf32, #tpu.memory_space<vmem>>, vector<32x32xf32>
      %73 = arith.truncf %72 : vector<32x32xf32> to vector<32x32xbf16>
      %cst_43 = arith.constant dense<0.000000e+00> : vector<8x32xf32>
      %74 = tpu.matmul %71, %73, %cst_43 {dimension_numbers = #tpu.dot_dimension_numbers<[1], [0], [0], [1], [0, 0, 1, 1], [], []>} : vector<8x32xbf16>, vector<32x32xbf16>, vector<8x32xf32> -> vector<8x32xf32>
      %c0_44 = arith.constant 0 : index
      %c0_45 = arith.constant 0 : index
      %75 = vector.load %arg8[%c0_44, %c0_45] : memref<1x32xf32, #tpu.memory_space<vmem>>, vector<1x32xf32>
      %76 = vector.broadcast %75 : vector<1x32xf32> to vector<8x32xf32>
      %77 = arith.addf %74, %76 : vector<8x32xf32>
      %c0_46 = arith.constant 0 : index
      %c0_47 = arith.constant 0 : index
      %c0_48 = arith.constant 0 : index
      %78 = vector.load %arg4[%c0_46, %c0_47, %c0_48] : memref<1x8x32xf32, #tpu.memory_space<vmem>>, vector<1x8x32xf32>
      %79 = vector.shape_cast %78 : vector<1x8x32xf32> to vector<8x32xf32>
      %80 = arith.truncf %79 : vector<8x32xf32> to vector<8x32xbf16>
      %c0_49 = arith.constant 0 : index
      %c0_50 = arith.constant 0 : index
      %81 = vector.load %arg9[%c0_49, %c0_50] : memref<32x32xf32, #tpu.memory_space<vmem>>, vector<32x32xf32>
      %82 = arith.truncf %81 : vector<32x32xf32> to vector<32x32xbf16>
      %cst_51 = arith.constant dense<0.000000e+00> : vector<8x32xf32>
      %83 = tpu.matmul %80, %82, %cst_51 {dimension_numbers = #tpu.dot_dimension_numbers<[1], [0], [0], [1], [0, 0, 1, 1], [], []>} : vector<8x32xbf16>, vector<32x32xbf16>, vector<8x32xf32> -> vector<8x32xf32>
      %c0_52 = arith.constant 0 : index
      %c0_53 = arith.constant 0 : index
      %84 = vector.load %arg10[%c0_52, %c0_53] : memref<1x32xf32, #tpu.memory_space<vmem>>, vector<1x32xf32>
      %85 = vector.broadcast %84 : vector<1x32xf32> to vector<8x32xf32>
      %86 = arith.addf %83, %85 : vector<8x32xf32>
      %87 = vector.extract_strided_slice %77 {offsets = [0, 0], sizes = [8, 8], strides = [1, 1]} : vector<8x32xf32> to vector<8x8xf32>
      %88 = arith.truncf %87 : vector<8x8xf32> to vector<8x8xbf16>
      %c0_54 = arith.constant 0 : index
      %c0_55 = arith.constant 0 : index
      %c0_56 = arith.constant 0 : index
      %89 = vector.load %arg15[%c0_54, %c0_55, %c0_56] : memref<4x8x8xbf16, #tpu.memory_space<vmem>>, vector<1x8x8xbf16>
      %90 = vector.shape_cast %89 : vector<1x8x8xbf16> to vector<8x8xbf16>
      %91 = vector.shape_cast %88 : vector<8x8xbf16> to vector<1x8x8xbf16>
      tpu.vector_store %arg15[%c0_54, %c0_55, %c0_56], %91 {strides = array<i32>} : memref<4x8x8xbf16, #tpu.memory_space<vmem>>, vector<1x8x8xbf16>,
      %92 = vector.extract_strided_slice %86 {offsets = [0, 0], sizes = [8, 8], strides = [1, 1]} : vector<8x32xf32> to vector<8x8xf32>
      %93 = arith.truncf %92 : vector<8x8xf32> to vector<8x8xbf16>
      %c0_57 = arith.constant 0 : index
      %c0_58 = arith.constant 0 : index
      %c0_59 = arith.constant 0 : index
      %94 = vector.load %arg16[%c0_57, %c0_58, %c0_59] : memref<4x8x8xbf16, #tpu.memory_space<vmem>>, vector<1x8x8xbf16>
      %95 = vector.shape_cast %94 : vector<1x8x8xbf16> to vector<8x8xbf16>
      %96 = vector.shape_cast %93 : vector<8x8xbf16> to vector<1x8x8xbf16>
      tpu.vector_store %arg16[%c0_57, %c0_58, %c0_59], %96 {strides = array<i32>} : memref<4x8x8xbf16, #tpu.memory_space<vmem>>, vector<1x8x8xbf16>,
      %97 = vector.extract_strided_slice %77 {offsets = [0, 8], sizes = [8, 8], strides = [1, 1]} : vector<8x32xf32> to vector<8x8xf32>
      %98 = arith.truncf %97 : vector<8x8xf32> to vector<8x8xbf16>
      %c1_60 = arith.constant 1 : index
      %c0_61 = arith.constant 0 : index
      %c0_62 = arith.constant 0 : index
      %99 = vector.load %arg15[%c1_60, %c0_61, %c0_62] : memref<4x8x8xbf16, #tpu.memory_space<vmem>>, vector<1x8x8xbf16>
      %100 = vector.shape_cast %99 : vector<1x8x8xbf16> to vector<8x8xbf16>
      %101 = vector.shape_cast %98 : vector<8x8xbf16> to vector<1x8x8xbf16>
      tpu.vector_store %arg15[%c1_60, %c0_61, %c0_62], %101 {strides = array<i32>} : memref<4x8x8xbf16, #tpu.memory_space<vmem>>, vector<1x8x8xbf16>,
      %102 = vector.extract_strided_slice %86 {offsets = [0, 8], sizes = [8, 8], strides = [1, 1]} : vector<8x32xf32> to vector<8x8xf32>
      %103 = arith.truncf %102 : vector<8x8xf32> to vector<8x8xbf16>
      %c1_63 = arith.constant 1 : index
      %c0_64 = arith.constant 0 : index
      %c0_65 = arith.constant 0 : index
      %104 = vector.load %arg16[%c1_63, %c0_64, %c0_65] : memref<4x8x8xbf16, #tpu.memory_space<vmem>>, vector<1x8x8xbf16>
      %105 = vector.shape_cast %104 : vector<1x8x8xbf16> to vector<8x8xbf16>
      %106 = vector.shape_cast %103 : vector<8x8xbf16> to vector<1x8x8xbf16>
      tpu.vector_store %arg16[%c1_63, %c0_64, %c0_65], %106 {strides = array<i32>} : memref<4x8x8xbf16, #tpu.memory_space<vmem>>, vector<1x8x8xbf16>,
      %107 = vector.extract_strided_slice %77 {offsets = [0, 16], sizes = [8, 8], strides = [1, 1]} : vector<8x32xf32> to vector<8x8xf32>
      %108 = arith.truncf %107 : vector<8x8xf32> to vector<8x8xbf16>
      %c2_66 = arith.constant 2 : index
      %c0_67 = arith.constant 0 : index
      %c0_68 = arith.constant 0 : index
      %109 = vector.load %arg15[%c2_66, %c0_67, %c0_68] : memref<4x8x8xbf16, #tpu.memory_space<vmem>>, vector<1x8x8xbf16>
      %110 = vector.shape_cast %109 : vector<1x8x8xbf16> to vector<8x8xbf16>
      %111 = vector.shape_cast %108 : vector<8x8xbf16> to vector<1x8x8xbf16>
      tpu.vector_store %arg15[%c2_66, %c0_67, %c0_68], %111 {strides = array<i32>} : memref<4x8x8xbf16, #tpu.memory_space<vmem>>, vector<1x8x8xbf16>,
      %112 = vector.extract_strided_slice %86 {offsets = [0, 16], sizes = [8, 8], strides = [1, 1]} : vector<8x32xf32> to vector<8x8xf32>
      %113 = arith.truncf %112 : vector<8x8xf32> to vector<8x8xbf16>
      %c2_69 = arith.constant 2 : index
      %c0_70 = arith.constant 0 : index
      %c0_71 = arith.constant 0 : index
      %114 = vector.load %arg16[%c2_69, %c0_70, %c0_71] : memref<4x8x8xbf16, #tpu.memory_space<vmem>>, vector<1x8x8xbf16>
      %115 = vector.shape_cast %114 : vector<1x8x8xbf16> to vector<8x8xbf16>
      %116 = vector.shape_cast %113 : vector<8x8xbf16> to vector<1x8x8xbf16>
      tpu.vector_store %arg16[%c2_69, %c0_70, %c0_71], %116 {strides = array<i32>} : memref<4x8x8xbf16, #tpu.memory_space<vmem>>, vector<1x8x8xbf16>,
      %117 = vector.extract_strided_slice %77 {offsets = [0, 24], sizes = [8, 8], strides = [1, 1]} : vector<8x32xf32> to vector<8x8xf32>
      %118 = arith.truncf %117 : vector<8x8xf32> to vector<8x8xbf16>
      %c3_72 = arith.constant 3 : index
      %c0_73 = arith.constant 0 : index
      %c0_74 = arith.constant 0 : index
      %119 = vector.load %arg15[%c3_72, %c0_73, %c0_74] : memref<4x8x8xbf16, #tpu.memory_space<vmem>>, vector<1x8x8xbf16>
      %120 = vector.shape_cast %119 : vector<1x8x8xbf16> to vector<8x8xbf16>
      %121 = vector.shape_cast %118 : vector<8x8xbf16> to vector<1x8x8xbf16>
      tpu.vector_store %arg15[%c3_72, %c0_73, %c0_74], %121 {strides = array<i32>} : memref<4x8x8xbf16, #tpu.memory_space<vmem>>, vector<1x8x8xbf16>,
      %122 = vector.extract_strided_slice %86 {offsets = [0, 24], sizes = [8, 8], strides = [1, 1]} : vector<8x32xf32> to vector<8x8xf32>
      %123 = arith.truncf %122 : vector<8x8xf32> to vector<8x8xbf16>
      %c3_75 = arith.constant 3 : index
      %c0_76 = arith.constant 0 : index
      %c0_77 = arith.constant 0 : index
      %124 = vector.load %arg16[%c3_75, %c0_76, %c0_77] : memref<4x8x8xbf16, #tpu.memory_space<vmem>>, vector<1x8x8xbf16>
      %125 = vector.shape_cast %124 : vector<1x8x8xbf16> to vector<8x8xbf16>
      %126 = vector.shape_cast %123 : vector<8x8xbf16> to vector<1x8x8xbf16>
      tpu.vector_store %arg16[%c3_75, %c0_76, %c0_77], %126 {strides = array<i32>} : memref<4x8x8xbf16, #tpu.memory_space<vmem>>, vector<1x8x8xbf16>,
    } else {
    }
    %c0 = arith.constant 0 : index
    %c0_1 = arith.constant 0 : index
    %c0_2 = arith.constant 0 : index
    %3 = vector.load %arg2[%c0, %c0_1, %c0_2] : memref<1x8x32xf32, #tpu.memory_space<vmem>>, vector<1x8x32xf32>
    %4 = vector.shape_cast %3 : vector<1x8x32xf32> to vector<8x32xf32>
    %5 = arith.truncf %4 : vector<8x32xf32> to vector<8x32xbf16>
    %c0_3 = arith.constant 0 : index
    %c0_4 = arith.constant 0 : index
    %6 = vector.load %arg5[%c0_3, %c0_4] : memref<32x32xf32, #tpu.memory_space<vmem>>, vector<32x32xf32>
    %7 = arith.truncf %6 : vector<32x32xf32> to vector<32x32xbf16>
    %cst = arith.constant dense<0.000000e+00> : vector<8x32xf32>
    %8 = tpu.matmul %5, %7, %cst {dimension_numbers = #tpu.dot_dimension_numbers<[1], [0], [0], [1], [0, 0, 1, 1], [], []>} : vector<8x32xbf16>, vector<32x32xbf16>, vector<8x32xf32> -> vector<8x32xf32>
    %c0_5 = arith.constant 0 : index
    %c0_6 = arith.constant 0 : index
    %9 = vector.load %arg6[%c0_5, %c0_6] : memref<1x32xf32, #tpu.memory_space<vmem>>, vector<1x32xf32>
    %10 = vector.broadcast %9 : vector<1x32xf32> to vector<8x32xf32>
    %11 = arith.addf %8, %10 : vector<8x32xf32>
    %cst_7 = arith.constant 0.353553385 : f32
    %12 = vector.broadcast %cst_7 : f32 to vector<8x32xf32>
    %13 = arith.mulf %11, %12 : vector<8x32xf32>
    %14 = vector.extract_strided_slice %13 {offsets = [0, 0], sizes = [8, 8], strides = [1, 1]} : vector<8x32xf32> to vector<8x8xf32>
    %15 = arith.truncf %14 : vector<8x8xf32> to vector<8x8xbf16>
    %c0_8 = arith.constant 0 : index
    %c0_9 = arith.constant 0 : index
    %c0_10 = arith.constant 0 : index
    %16 = vector.load %arg14[%c0_8, %c0_9, %c0_10] : memref<4x8x8xbf16, #tpu.memory_space<vmem>>, vector<1x8x8xbf16>
    %17 = vector.shape_cast %16 : vector<1x8x8xbf16> to vector<8x8xbf16>
    %18 = vector.shape_cast %15 : vector<8x8xbf16> to vector<1x8x8xbf16>
    tpu.vector_store %arg14[%c0_8, %c0_9, %c0_10], %18 {strides = array<i32>} : memref<4x8x8xbf16, #tpu.memory_space<vmem>>, vector<1x8x8xbf16>,
    %19 = vector.extract_strided_slice %13 {offsets = [0, 8], sizes = [8, 8], strides = [1, 1]} : vector<8x32xf32> to vector<8x8xf32>
    %20 = arith.truncf %19 : vector<8x8xf32> to vector<8x8xbf16>
    %c1 = arith.constant 1 : index
    %c0_11 = arith.constant 0 : index
    %c0_12 = arith.constant 0 : index
    %21 = vector.load %arg14[%c1, %c0_11, %c0_12] : memref<4x8x8xbf16, #tpu.memory_space<vmem>>, vector<1x8x8xbf16>
    %22 = vector.shape_cast %21 : vector<1x8x8xbf16> to vector<8x8xbf16>
    %23 = vector.shape_cast %20 : vector<8x8xbf16> to vector<1x8x8xbf16>
    tpu.vector_store %arg14[%c1, %c0_11, %c0_12], %23 {strides = array<i32>} : memref<4x8x8xbf16, #tpu.memory_space<vmem>>, vector<1x8x8xbf16>,
    %24 = vector.extract_strided_slice %13 {offsets = [0, 16], sizes = [8, 8], strides = [1, 1]} : vector<8x32xf32> to vector<8x8xf32>
    %25 = arith.truncf %24 : vector<8x8xf32> to vector<8x8xbf16>
    %c2 = arith.constant 2 : index
    %c0_13 = arith.constant 0 : index
    %c0_14 = arith.constant 0 : index
    %26 = vector.load %arg14[%c2, %c0_13, %c0_14] : memref<4x8x8xbf16, #tpu.memory_space<vmem>>, vector<1x8x8xbf16>
    %27 = vector.shape_cast %26 : vector<1x8x8xbf16> to vector<8x8xbf16>
    %28 = vector.shape_cast %25 : vector<8x8xbf16> to vector<1x8x8xbf16>
    tpu.vector_store %arg14[%c2, %c0_13, %c0_14], %28 {strides = array<i32>} : memref<4x8x8xbf16, #tpu.memory_space<vmem>>, vector<1x8x8xbf16>,
    %29 = vector.extract_strided_slice %13 {offsets = [0, 24], sizes = [8, 8], strides = [1, 1]} : vector<8x32xf32> to vector<8x8xf32>
    %30 = arith.truncf %29 : vector<8x8xf32> to vector<8x8xbf16>
    %c3 = arith.constant 3 : index
    %c0_15 = arith.constant 0 : index
    %c0_16 = arith.constant 0 : index
    %31 = vector.load %arg14[%c3, %c0_15, %c0_16] : memref<4x8x8xbf16, #tpu.memory_space<vmem>>, vector<1x8x8xbf16>
    %32 = vector.shape_cast %31 : vector<1x8x8xbf16> to vector<8x8xbf16>
    %33 = vector.shape_cast %30 : vector<8x8xbf16> to vector<1x8x8xbf16>
    tpu.vector_store %arg14[%c3, %c0_15, %c0_16], %33 {strides = array<i32>} : memref<4x8x8xbf16, #tpu.memory_space<vmem>>, vector<1x8x8xbf16>,
    %c0_17 = arith.constant 0 : index
    %c0_18 = arith.constant 0 : index
    %c0_19 = arith.constant 0 : index
    %34 = vector.load %arg14[%c0_17, %c0_18, %c0_19] : memref<4x8x8xbf16, #tpu.memory_space<vmem>>, vector<4x8x8xbf16>
    %c0_20 = arith.constant 0 : index
    %c0_21 = arith.constant 0 : index
    %c0_22 = arith.constant 0 : index
    %35 = vector.load %arg15[%c0_20, %c0_21, %c0_22] : memref<4x8x8xbf16, #tpu.memory_space<vmem>>, vector<4x8x8xbf16>
    "tpu.trace_start"() <{level = 10 : i32, message = "hqe,hke->hqk"}> : () -> ()
    %cst_23 = arith.constant dense<0.000000e+00> : vector<4x8x8xf32>
    %36 = tpu.matmul %34, %35, %cst_23 {dimension_numbers = #tpu.dot_dimension_numbers<[2], [2], [1], [1], [0, 0, 0, 1, 1, 1], [0], [0]>} : vector<4x8x8xbf16>, vector<4x8x8xbf16>, vector<4x8x8xf32> -> vector<4x8x8xf32>
    "tpu.trace_stop"() : () -> ()
    %cst_24 = arith.constant dense<0xFF800000> : vector<4x8xf32>
    %37 = vector.multi_reduction <maximumf>, %36, %cst_24 [2] : vector<4x8x8xf32> to vector<4x8xf32>
    %38 = vector.shape_cast %37 : vector<4x8xf32> to vector<4x8x1xf32>
    %39 = vector.broadcast %38 : vector<4x8x1xf32> to vector<4x8x8xf32>
    %40 = arith.subf %36, %39 : vector<4x8x8xf32>
    %41 = math.exp %40 : vector<4x8x8xf32>
    %cst_25 = arith.constant dense<0.000000e+00> : vector<4x8xf32>
    %42 = vector.multi_reduction <add>, %41, %cst_25 [2] : vector<4x8x8xf32> to vector<4x8xf32>
    %43 = vector.shape_cast %42 : vector<4x8xf32> to vector<4x8x1xf32>
    %44 = tpu.reciprocal %43 {approx = true} : vector<4x8x1xf32> -> vector<4x8x1xf32>
    %45 = vector.broadcast %44 : vector<4x8x1xf32> to vector<4x8x8xf32>
    %46 = arith.mulf %41, %45 : vector<4x8x8xf32>
    %47 = arith.truncf %46 : vector<4x8x8xf32> to vector<4x8x8xbf16>
    %c0_26 = arith.constant 0 : index
    %c0_27 = arith.constant 0 : index
    %c0_28 = arith.constant 0 : index
    %48 = vector.load %arg16[%c0_26, %c0_27, %c0_28] : memref<4x8x8xbf16, #tpu.memory_space<vmem>>, vector<4x8x8xbf16>
    "tpu.trace_start"() <{level = 10 : i32, message = "hqk,hkd->hqd"}> : () -> ()
    %cst_29 = arith.constant dense<0.000000e+00> : vector<4x8x8xf32>
    %49 = tpu.matmul %47, %48, %cst_29 {dimension_numbers = #tpu.dot_dimension_numbers<[2], [1], [1], [2], [0, 0, 0, 1, 1, 2], [0], [0]>} : vector<4x8x8xbf16>, vector<4x8x8xbf16>, vector<4x8x8xf32> -> vector<4x8x8xf32>
    "tpu.trace_stop"() : () -> ()
    %50 = vector.extract_strided_slice %49 {offsets = [0, 0, 0], sizes = [1, 8, 8], strides = [1, 1, 1]} : vector<4x8x8xf32> to vector<1x8x8xf32>
    %51 = vector.shape_cast %50 : vector<1x8x8xf32> to vector<8x8xf32>
    %52 = vector.extract_strided_slice %49 {offsets = [1, 0, 0], sizes = [1, 8, 8], strides = [1, 1, 1]} : vector<4x8x8xf32> to vector<1x8x8xf32>
    %53 = vector.shape_cast %52 : vector<1x8x8xf32> to vector<8x8xf32>
    %54 = vector.extract_strided_slice %49 {offsets = [2, 0, 0], sizes = [1, 8, 8], strides = [1, 1, 1]} : vector<4x8x8xf32> to vector<1x8x8xf32>
    %55 = vector.shape_cast %54 : vector<1x8x8xf32> to vector<8x8xf32>
    %56 = vector.extract_strided_slice %49 {offsets = [3, 0, 0], sizes = [1, 8, 8], strides = [1, 1, 1]} : vector<4x8x8xf32> to vector<1x8x8xf32>
    %57 = vector.shape_cast %56 : vector<1x8x8xf32> to vector<8x8xf32>
    %58 = tpu.concatenate %51, %53, %55, %57 in 1 : vector<8x8xf32>, vector<8x8xf32>, vector<8x8xf32>, vector<8x8xf32> -> vector<8x32xf32>
    %59 = arith.truncf %58 : vector<8x32xf32> to vector<8x32xbf16>
    %c0_30 = arith.constant 0 : index
    %c0_31 = arith.constant 0 : index
    %60 = vector.load %arg11[%c0_30, %c0_31] : memref<32x32xf32, #tpu.memory_space<vmem>>, vector<32x32xf32>
    %61 = arith.truncf %60 : vector<32x32xf32> to vector<32x32xbf16>
    %cst_32 = arith.constant dense<0.000000e+00> : vector<8x32xf32>
    %62 = tpu.matmul %59, %61, %cst_32 {dimension_numbers = #tpu.dot_dimension_numbers<[1], [0], [0], [1], [0, 0, 1, 1], [], []>} : vector<8x32xbf16>, vector<32x32xbf16>, vector<8x32xf32> -> vector<8x32xf32>
    %c0_33 = arith.constant 0 : index
    %c0_34 = arith.constant 0 : index
    %63 = vector.load %arg12[%c0_33, %c0_34] : memref<1x32xf32, #tpu.memory_space<vmem>>, vector<1x32xf32>
    %64 = vector.broadcast %63 : vector<1x32xf32> to vector<8x32xf32>
    %65 = arith.addf %62, %64 : vector<8x32xf32>
    %c0_35 = arith.constant 0 : index
    %c0_36 = arith.constant 0 : index
    %c0_37 = arith.constant 0 : index
    %66 = vector.load %arg13[%c0_35, %c0_36, %c0_37] : memref<1x8x32xf32, #tpu.memory_space<vmem>>, vector<1x8x32xf32>
    %67 = vector.shape_cast %66 : vector<1x8x32xf32> to vector<8x32xf32>
    %68 = vector.shape_cast %65 : vector<8x32xf32> to vector<1x8x32xf32>
    tpu.vector_store %arg13[%c0_35, %c0_36, %c0_37], %68 {strides = array<i32>} : memref<1x8x32xf32, #tpu.memory_space<vmem>>, vector<1x8x32xf32>,
    return
  }
  func.func @transform_0(%arg0: i32, %arg1: i32) -> (i32, i32, i32) {
    %c0_i32 = arith.constant 0 : i32
    %c0_i32_0 = arith.constant 0 : i32
    return %arg0, %arg1, %c0_i32 : i32, i32, i32
  }
  func.func @transform_1(%arg0: i32, %arg1: i32) -> (i32, i32, i32) {
    %c0_i32 = arith.constant 0 : i32
    %c0_i32_0 = arith.constant 0 : i32
    %c0_i32_1 = arith.constant 0 : i32
    return %arg0, %c0_i32, %c0_i32_0 : i32, i32, i32
  }
  func.func @transform_2(%arg0: i32, %arg1: i32) -> (i32, i32, i32) {
    %c0_i32 = arith.constant 0 : i32
    %c0_i32_0 = arith.constant 0 : i32
    %c0_i32_1 = arith.constant 0 : i32
    return %arg0, %c0_i32, %c0_i32_0 : i32, i32, i32
  }
  func.func @transform_3(%arg0: i32, %arg1: i32) -> (i32, i32) {
    %c0_i32 = arith.constant 0 : i32
    %c0_i32_0 = arith.constant 0 : i32
    %c0_i32_1 = arith.constant 0 : i32
    return %c0_i32, %c0_i32_0 : i32, i32
  }
  func.func @transform_4(%arg0: i32, %arg1: i32) -> (i32, i32) {
    %c0_i32 = arith.constant 0 : i32
    %c0_i32_0 = arith.constant 0 : i32
    %c0_i32_1 = arith.constant 0 : i32
    return %c0_i32, %c0_i32_0 : i32, i32
  }
  func.func @transform_5(%arg0: i32, %arg1: i32) -> (i32, i32) {
    %c0_i32 = arith.constant 0 : i32
    %c0_i32_0 = arith.constant 0 : i32
    %c0_i32_1 = arith.constant 0 : i32
    return %c0_i32, %c0_i32_0 : i32, i32
  }
  func.func @transform_6(%arg0: i32, %arg1: i32) -> (i32, i32) {
    %c0_i32 = arith.constant 0 : i32
    %c0_i32_0 = arith.constant 0 : i32
    %c0_i32_1 = arith.constant 0 : i32
    return %c0_i32, %c0_i32_0 : i32, i32
  }
  func.func @transform_7(%arg0: i32, %arg1: i32) -> (i32, i32) {
    %c0_i32 = arith.constant 0 : i32
    %c0_i32_0 = arith.constant 0 : i32
    %c0_i32_1 = arith.constant 0 : i32
    return %c0_i32, %c0_i32_0 : i32, i32
  }
  func.func @transform_8(%arg0: i32, %arg1: i32) -> (i32, i32) {
    %c0_i32 = arith.constant 0 : i32
    %c0_i32_0 = arith.constant 0 : i32
    %c0_i32_1 = arith.constant 0 : i32
    return %c0_i32, %c0_i32_0 : i32, i32
  }
  func.func @transform_9(%arg0: i32, %arg1: i32) -> (i32, i32) {
    %c0_i32 = arith.constant 0 : i32
    %c0_i32_0 = arith.constant 0 : i32
    %c0_i32_1 = arith.constant 0 : i32
    return %c0_i32, %c0_i32_0 : i32, i32
  }
  func.func @transform_10(%arg0: i32, %arg1: i32) -> (i32, i32) {
    %c0_i32 = arith.constant 0 : i32
    %c0_i32_0 = arith.constant 0 : i32
    %c0_i32_1 = arith.constant 0 : i32
    return %c0_i32, %c0_i32_0 : i32, i32
  }
  func.func @transform_11(%arg0: i32, %arg1: i32) -> (i32, i32, i32) {
    %c0_i32 = arith.constant 0 : i32
    %c0_i32_0 = arith.constant 0 : i32
    return %arg0, %arg1, %c0_i32 : i32, i32, i32
  }
}

</mosaic_0001>

<bundles_post_ra>
// kernel: tpu_custom_call.1
= control target key start
LH: loop header
LB: loop body
LE: loop exit
PB: predicated region body
PF: predicated region fallthrough
CT: control target
= control target key end

     0   :  { %s2803_s0 = inlined_call_operand.hbm [shape: f32[2,16,32], index: 0, kind: input, shape index: {}]   ;;  %s2804_s1 = inlined_call_operand.hbm [shape: f32[2,8,32], index: 1, kind: input, shape index: {}]   ;;  %s2805_s2 = inlined_call_operand.hbm [shape: f32[2,8,32], index: 2, kind: input, shape index: {}]   ;;  %s2806_s3 = inlined_call_operand.hbm [shape: f32[32,32], index: 3, kind: input, shape index: {}]   ;;  %s2807_s4 = inlined_call_operand.vmem [shape: f32[1,32], index: 4, kind: input, shape index: {}]   ;;  %s2808_s5 = inlined_call_operand.hbm [shape: f32[32,32], index: 5, kind: input, shape index: {}]   ;;  %s2809_s6 = inlined_call_operand.vmem [shape: f32[1,32], index: 6, kind: input, shape index: {}]   ;;  %s2810_s7 = inlined_call_operand.hbm [shape: f32[32,32], index: 7, kind: input, shape index: {}]   ;;  %s2811_s8 = inlined_call_operand.hbm [shape: f32[1,32], index: 8, kind: input, shape index: {}]   ;;  %s2812_s9 = inlined_call_operand.vmem [shape: f32[32,32], index: 9, kind: input, shape index: {}]   ;;  %s2813_s10 = inlined_call_operand.vmem [shape: f32[1,32], index: 10, kind: input, shape index: {}]   ;;  %s2814_s11 = inlined_call_operand.hbm [shape: f32[2,16,32], index: 11, kind: output, shape index: {}]  }
   0x1   :  { %2838 = sst [smem:[#allocation31_spill]] %s2804_s1 }
   0x2   :  { %2839 = sst [smem:[#allocation32_spill]] %s2805_s2 }
   0x3   :  { %2840 = sst [smem:[#allocation33_spill]] %s2806_s3 }
   0x4   :  { %2841 = sst [smem:[#allocation34_spill]] %s2807_s4 }
   0x5   :  { %2842 = sst [smem:[#allocation35_spill]] %s2808_s5 }
   0x6   :  { %2843 = sst [smem:[#allocation36_spill]] %s2809_s6 }
   0x7   :  { %2844 = sst [smem:[#allocation37_spill]] %s2810_s7 }
   0x8   :  { %2845 = sst [smem:[#allocation38_spill]] %s2811_s8 }
   0x9   :  { %2846 = sst [smem:[#allocation39_spill]] %s2812_s9 }
   0xa   :  { %2847 = sst [smem:[#allocation40_spill]] %s2813_s10 }
   0xb   :  { %2848 = sst [smem:[#allocation41_spill]] %s2814_s11 }
   0xc   :  { %16 = vsyncpa [#allocation6], 0 }
   0xd   :  { %18 = vsyncpa [#allocation6 + $0x1], 0 }
   0xe   :  { %19 = vsyncpa [#allocation9], 0 }
   0xf   :  { %21 = vsyncpa [#allocation9 + $0x1], 0 }
  0x10   :  { %22 = vsyncpa [#allocation12], 0 }
  0x11   :  { %23 = vsyncpa [#allocation15], 0 }
  0x12   :  { %24 = vsyncpa [#allocation7], 0 }
  0x13   :  { %26 = vsyncpa [#allocation7 + $0x1], 0  ;;  %s2243_s17 = smov 0   ;;  %s2245_s18 = smov 0  }
  0x14   :  { %s2247_s19 = smov 0   ;;  %s2249_s20 = smov 0  }
  0x15   :  { %s2251_s21 = smov 0   ;;  %s2253_s22 = smov 0  }
  0x16   :  { %s2255_s23 = smov 0   ;;  %s2257_s24 = smov 0  }
  0x17   :  { %s2259_s25 = smov 0   ;;  %s2261_s26 = smov 0  }
  0x18   :  { %s2263_s27 = smov 0  }
  0x19 LB: > { %2849 = sst [smem:[#allocation23_spill]] %s2130_s20  ;;  %s2299_s28 = sadd.s32 4294967295, %s2158_s27   ;;  %s2158_s27 = sphi %s2263_s27, %s32_s27   ;;  %s2154_s26 = sphi %s2261_s26, %s2917_s26   ;;  %s2150_s25 = sphi %s2259_s25, %s2916_s25   ;;  %s2146_s24 = sphi %s2257_s24, %s2915_s24   ;;  %s2142_s23 = sphi %s2255_s23, %s2914_s23   ;;  %s2138_s22 = sphi %s2253_s22, %s2913_s22   ;;  %s2134_s21 = sphi %s2251_s21, %s2912_s21   ;;  %s2130_s20 = sphi %s2249_s20, %s2911_s20   ;;  %s2126_s19 = sphi %s2247_s19, %s2910_s19   ;;  %s2122_s18 = sphi %s2245_s18, %s2909_s18   ;;  %s2118_s17 = sphi %s2243_s17, %s2908_s17  }
  0x1a   : > { %2850 = sst [smem:[#allocation24_spill]] %s2142_s23  ;;  %p1480_p0 = scmp.ge.s32.totalorder %s2158_s27, 1 }
  0x1b   : > { %2851 = sst [smem:[#allocation25_spill]] %s2146_s24  ;;  %p2817_p1 = scmp.eq.s32.totalorder %s2299_s28, 0 }
  0x1c   : > { %p325_p2 = scmp.lt.s32.totalorder %s2158_s27, 5  ;;  %s2160_s30 = smov [#allocation11]  }
  0x1d   : > { %s337_s12 = sshll.u32 %s2160_s30, 4  ;;  %s2161_s14 = smov [#allocation14]   ;;  %s338_s12 = int_to_ptr.vmem [resolvable:$true] %s337_s12 }
  0x1e   : > { %p2304_p3 = pnand %p1480_p0, %p325_p2  ;;  %s369_s15 = sshll.u32 %s2161_s14, 4  ;;  %s2316_s15 = int_to_ptr.vmem [resolvable:$true] %s369_s15 }
  0x1f   : > { %s2855_s3 = sld [smem:[#allocation33_spill]] }
  0x20   : > { %s2852_s29 = scalar_select %p2304_p3, 1, 0 }
  0x21   : > { %p1662_p4 = pneg %p2304_p3 }
  0x22   : > { %2853 = sst [smem:[#allocation26_spill]] %s2852_s29 }
  0x23   : > { %p2312_p5 = pnand %p1662_p4, %p2817_p1 }
  0x25   : > { %s2854_s13 = scalar_select %p2312_p5, 1, 0 }
  0x26   : > { %s1822_s10 = scalar_lea.hbm %s2855_s3, 512  ;;  %p2326_p7 = pneg %p2312_p5 }
  0x27   : > { %p1823_p6 = scmp.ne.s32.totalorder %s2855_s3, %s1822_s10  ;;  %p1829_p10 = scmp.lt.u32.totalorder %s1822_s10, %s2855_s3 }
  0x29   : > { %p1825_p8 = pnand %p2326_p7, %p1823_p6 }
  0x2b   : > { %p1826_p9 = pneg %p1825_p8 }
  0x2d   : > { %p1831_p11 = pnand %p1829_p10, %p1826_p9 }
  0x2f   : > { %1834 = shalt.err (!%p1831_p11)
}
  0x30   : > { %s1835_s11 = scalar_lea.vmem %s338_s12, 512  ;;  %p1843_p2 = scmp.lt.s32.totalorder %s338_s12, %s338_s12 }
  0x31   : > { %p1836_p12 = scmp.ne.s32.totalorder %s338_s12, %s1835_s11  ;;  %p1844_p4 = scmp.lt.s32.totalorder %s1835_s11, %s1835_s11 }
  0x33   : > { %p1838_p13 = pnand %p1836_p12, %p2326_p7  ;;  %p1845_p1 = por %p1844_p4, %p1843_p2 }
  0x35   : > { %p1839_p0 = pneg %p1838_p13 }
  0x37   : > { %p1846_p3 = pnand %p1845_p1, %p1839_p0 }
  0x39   : > { %1849 = shalt.err (!%p1846_p3)
}
  0x3a   : > { %s2822_s9 = smov 128   ;;  %s2823_s24 = smov 8  }
  0x3b   : > { %1665 = dma.hbm_to_vmem [thread:$0]  (!%p2312_p5), %s2855_s3, 512, %s338_s12, [#allocation12], %s2822_s9, %s2822_s9, %s2823_s24  }
  0x3c   : > { %s2857_s7 = sld [smem:[#allocation37_spill]] }
  0x42   : > { %s1850_s6 = scalar_lea.hbm %s2857_s7, 512 }
  0x43   : > { %p1851_p1 = scmp.ne.s32.totalorder %s2857_s7, %s1850_s6  ;;  %p1857_p8 = scmp.lt.u32.totalorder %s1850_s6, %s2857_s7 }
  0x45   : > { %p1853_p3 = pnand %p1851_p1, %p2326_p7 }
  0x47   : > { %p1854_p6 = pneg %p1853_p3 }
  0x49   : > { %p1859_p9 = pnand %p1857_p8, %p1854_p6 }
  0x4b   : > { %1862 = shalt.err (!%p1859_p9)
}
  0x4c   : > { %s1863_s12 = scalar_lea.vmem %s2316_s15, 512  ;;  %p1871_p13 = scmp.lt.s32.totalorder %s2316_s15, %s2316_s15 }
  0x4d   : > { %p1864_p10 = scmp.ne.s32.totalorder %s2316_s15, %s1863_s12  ;;  %p1872_p0 = scmp.lt.s32.totalorder %s1863_s12, %s1863_s12 }
  0x4f   : > { %p1866_p11 = pnand %p1864_p10, %p2326_p7  ;;  %p1873_p2 = por %p1872_p0, %p1871_p13 }
  0x51   : > { %p1867_p12 = pneg %p1866_p11 }
  0x53   : > { %p1874_p4 = pnand %p1873_p2, %p1867_p12 }
  0x55   : > { %1877 = shalt.err (!%p1874_p4)
}
  0x56   : > { %1671 = dma.hbm_to_vmem [thread:$0]  (!%p2312_p5), %s2857_s7, 512, %s2316_s15, [#allocation15], %s2822_s9, %s2822_s9, %s2823_s24  }
  0x57   : > { %p2825_p1 = scmp.eq.s32.totalorder %s2158_s27, 0  ;;  %p86_p3 = scmp.ne.s32.totalorder %s2126_s19, %s2122_s18 }
  0x58   : > { %p92_p6 = scmp.ne.s32.totalorder %s2122_s18, %s2118_s17  ;;  %p2824_p8 = scmp.lt.s32.totalorder %s2158_s27, 4 }
  0x59   : > { %s420_s23 = sand.u32 1, %s2158_s27   ;;  %p88_p9 = por %p86_p3, %p2825_p1 }
  0x5a   : > { %p2858_p10 = scmp.eq.s32.totalorder %s2299_s28, 0  ;;  %s422_s4 = sand.u32 1, %s2126_s19  }
  0x5b   : > { %s2387_s10 = sshll.u32 %s422_s4, 3  ;;  %s2821_s16 = sshll.u32 %s2154_s26, 7 }
  0x5c   : > { %p2382_p11 = por %p92_p6, %p2858_p10  ;;  %s2860_s1 = sld [smem:[#allocation31_spill]] }
  0x5d   : > { %s424_s17 = scalar_lea.vmem [#allocation8], %s2387_s10  ;;  %p2400_p12 = pnand %p2824_p8, %p88_p9 }
  0x5e   : > { %s2859_s29 = scalar_select %p2382_p11, 1, 0 }
  0x5f   : > { %s431_s12 = sshll.u32 %s424_s17, 4  ;;  %s2407_s4 = scalar_lea.sflag [#allocation9], %s420_s23  ;;  %s2405_s12 = int_to_ptr.vmem [resolvable:$true] %s431_s12 }
  0x60   : > { %p2829_p0 = pneg %p2400_p12 }
  0x62   : > { %s2395_s11 = scalar_lea.hbm %s2860_s1, %s2821_s16  ;;  %s1883_s16 = scalar_lea.hbm %s2860_s1, 256 }
  0x63   : > { %s1878_s14 = scalar_lea.hbm %s2395_s11, 128  ;;  %p1884_p3 = scmp.lt.u32.totalorder %s2395_s11, %s2860_s1 }
  0x64   : > { %p1879_p13 = scmp.ne.s32.totalorder %s2395_s11, %s1878_s14  ;;  %p1885_p6 = scmp.lt.u32.totalorder %s1883_s16, %s1878_s14 }
  0x65   : > { %p1887_p10 = scmp.lt.u32.totalorder %s1878_s14, %s2395_s11 }
  0x66   : > { %p1881_p2 = pnand %p2829_p0, %p1879_p13  ;;  %p1886_p9 = por %p1885_p6, %p1884_p3 }
  0x68   : > { %p1882_p4 = pneg %p1881_p2  ;;  %p1888_p8 = por %p1887_p10, %p1886_p9 }
  0x6a   : > { %p1889_p1 = pnand %p1888_p8, %p1882_p4 }
  0x6c   : > { %1892 = shalt.err (!%p1889_p1)
}
  0x6d   : > { %s1893_s23 = scalar_lea.vmem %s2405_s12, 128  ;;  %s2164_s15 = smov [#allocation8]  }
  0x6e   : > { %p1894_p13 = scmp.ne.s32.totalorder %s2405_s12, %s1893_s23  ;;  %s1898_s17 = sshll.u32 %s2164_s15, 4  ;;  %s1899_s17 = int_to_ptr.vmem [resolvable:$false] %s1898_s17 }
  0x6f   : > { %s1900_s9 = scalar_lea.vmem %s1899_s17, 256  ;;  %p1901_p5 = scmp.lt.s32.totalorder %s2405_s12, %s1899_s17 }
  0x70   : > { %p1896_p2 = pnand %p1894_p13, %p2829_p0  ;;  %p1902_p3 = scmp.lt.s32.totalorder %s1900_s9, %s1893_s23 }
  0x72   : > { %p1897_p11 = pneg %p1896_p2  ;;  %p1903_p6 = por %p1902_p3, %p1901_p5 }
  0x74   : > { %p1904_p9 = pnand %p1903_p6, %p1897_p11 }
  0x76   : > { %1907 = shalt.err (!%p1904_p9)
}
  0x77   : > { %1681 = dma.hbm_to_vmem [thread:$0]  (!%p2400_p12), %s2395_s11, 128, %s2405_s12, %s2407_s4  }
  0x78   : > { %s2165_s24 = smov [#allocation13]   ;;  %s2166_s14 = smov [#allocation16]  }
  0x79   : > { %s353_s16 = sshll.u32 %s2165_s24, 4  ;;  %s383_s6 = sshll.u32 %s2166_s14, 4  ;;  %s354_s16 = int_to_ptr.vmem [resolvable:$true] %s353_s16  ;;  %s2435_s6 = int_to_ptr.vmem [resolvable:$true] %s383_s6 }
  0x7a   : > { %s2862_s5 = sld [smem:[#allocation35_spill]] }
  0x80   : > { %s1908_s23 = scalar_lea.hbm %s2862_s5, 512 }
  0x81   : > { %p1909_p5 = scmp.ne.s32.totalorder %s2862_s5, %s1908_s23  ;;  %p1915_p11 = scmp.lt.u32.totalorder %s1908_s23, %s2862_s5 }
  0x83   : > { %p1911_p1 = pnand %p1909_p5, %p2326_p7 }
  0x85   : > { %p1912_p8 = pneg %p1911_p1 }
  0x87   : > { %p1917_p4 = pnand %p1915_p11, %p1912_p8 }
  0x89   : > { %1920 = shalt.err (!%p1917_p4)
}
  0x8a   : > { %s1921_s12 = scalar_lea.vmem %s354_s16, 512  ;;  %p1929_p3 = scmp.lt.s32.totalorder %s354_s16, %s354_s16 }
  0x8b   : > { %p1922_p10 = scmp.ne.s32.totalorder %s354_s16, %s1921_s12  ;;  %p1930_p6 = scmp.lt.s32.totalorder %s1921_s12, %s1921_s12 }
  0x8d   : > { %p1924_p13 = pnand %p1922_p10, %p2326_p7  ;;  %p1931_p9 = por %p1930_p6, %p1929_p3 }
  0x8f   : > { %p1925_p2 = pneg %p1924_p13 }
  0x91   : > { %p1932_p0 = pnand %p1931_p9, %p1925_p2 }
  0x93   : > { %1935 = shalt.err (!%p1932_p0)
}
  0x94   : > { %p2863_p5 = scmp.ne.s32.totalorder %s2854_s13, 0  ;;  %s2864_s1 = smov 8  }
  0x95   : > { %s2865_s24 = smov 128   ;;  %s2866_s8 = sld [smem:[#allocation38_spill]] }
  0x96   : > { %1668 = dma.hbm_to_vmem [thread:$0]  (!%p2863_p5), %s2862_s5, 512, %s354_s16, [#allocation12], %s2865_s24, %s2865_s24, %s2864_s1  }
  0x9b   : > { %s1936_s23 = scalar_lea.hbm %s2866_s8, 16 }
  0x9c   : > { %p1937_p1 = scmp.ne.s32.totalorder %s2866_s8, %s1936_s23  ;;  %p1943_p11 = scmp.lt.u32.totalorder %s1936_s23, %s2866_s8 }
  0x9e   : > { %p1939_p0 = pnand %p1937_p1, %p2326_p7 }
  0xa0   : > { %p1940_p8 = pneg %p1939_p0 }
  0xa2   : > { %p1945_p4 = pnand %p1943_p11, %p1940_p8 }
  0xa4   : > { %1948 = shalt.err (!%p1945_p4)
}
  0xa5   : > { %s1949_s16 = scalar_lea.vmem %s2435_s6, 16  ;;  %s1956_s1 = scalar_lea.vmem %s2435_s6, 32 }
  0xa6   : > { %p1950_p10 = scmp.ne.s32.totalorder %s2435_s6, %s1949_s16  ;;  %p1957_p3 = scmp.lt.s32.totalorder %s2435_s6, %s2435_s6 }
  0xa7   : > { %p1958_p6 = scmp.lt.s32.totalorder %s1956_s1, %s1949_s16 }
  0xa8   : > { %p1952_p13 = pnand %p1950_p10, %p2326_p7 }
  0xa9   : > { %p1959_p9 = por %p1958_p6, %p1957_p3 }
  0xaa   : > { %p1953_p2 = pneg %p1952_p13 }
  0xac   : > { %p1960_p1 = pnand %p1959_p9, %p1953_p2 }
  0xae   : > { %1963 = shalt.err (!%p1960_p1)
}
  0xaf   : > { %1674 = dma.hbm_to_vmem [thread:$0]  (!%p2863_p5), %s2866_s8, 16, %s2435_s6, [#allocation15]  }
  0xb0   : > { %s1479_s30 = sadd.s32 4294967294, %s2158_s27   ;;  %s41_s13 = sadd.s32 1, %s2150_s25 }
  0xb1   : > { %p42_p7 = scmp.ge.s32.totalorder %s41_s13, 2  ;;  %s44_s3 = sadd.s32 1, %s2154_s26 }
  0xb2   : > { %s53_s14 = sadd.s32 1, %s2138_s22  ;;  %p60_p0 = scmp.ne.s32.totalorder %s2138_s22, %s2134_s21 }
  0xb3   : > { %s2919_s13 = smov (%p42_p7, %s41_s13), 0  ;;  %s2921_s3 = smov (!%p42_p7, %s44_s3), %s2154_s26 }
  0xb4   : > { %2867 = sst [smem:[#allocation27_spill]] %s2919_s13  ;;  %s49_s15 = ssub.s32 %s2150_s25, %s2919_s13 }
  0xb5   : > { %p2868_p8 = scmp.eq.s32.totalorder %s2158_s27, 0  ;;  %p46_p5 = scmp.ge.s32.totalorder %s2921_s3, 2 }
  0xb6   : > { %p66_p4 = scmp.ne.s32.totalorder %s2134_s21, %s2130_s20  ;;  %p312_p10 = scmp.eq.s32.totalorder %s2299_s28, 3 }
  0xb7   : > { %p2495_p11 = por %p2868_p8, %p60_p0  ;;  %p318_p13 = scmp.eq.s32.totalorder %s1479_s30, 3 }
  0xb8   : > { %s2923_s3 = smov (%p46_p5, %s2921_s3), 0  ;;  %p2871_p2 = scmp.eq.s32.totalorder %s2299_s28, 0 }
  0xb9   : > { %2870 = sst [smem:[#allocation28_spill]] %s2923_s3  ;;  %p2510_p6 = por %p312_p10, %p60_p0 }
  0xba   : > { %p2506_p3 = por %p2871_p2, %p66_p4  ;;  %s48_s9 = ssub.s32 %s2154_s26, %s2923_s3 }
  0xbb   : > { %s2873_s23 = scalar_select %p2510_p6, 1, 0 }
  0xbc   : > { %s2872_s17 = scalar_select %p2506_p3, 1, 0 }
  0xbd   : > { %2874 = sst [smem:[#allocation29_spill]] %s2873_s23  ;;  %p2516_p9 = por %p318_p13, %p66_p4 }
  0xbe   : > { %s50_s12 = sor.u32 %s49_s15, %s48_s9  ;;  %p77_p1 = scmp.eq.s32.totalorder %s48_s9, 0 }
  0xbf   : > { %s2875_s11 = scalar_select %p2516_p9, 1, 0 }
  0xc0   : > { %p51_p7 = scmp.eq.s32.totalorder %s50_s12, 0  ;;  %s400_s16 = sand.u32 1, %s2138_s22  }
  0xc1   : > { %2876 = sst [smem:[#allocation30_spill]] %s2875_s11  ;;  %s2877_s1 = sadd.s32 1, %s2126_s19 }
  0xc2   : > { %s2524_s7 = scalar_select %p77_p1, %s2126_s19, %s2877_s1  }
  0xc3   : > { %s2527_s24 = scalar_select %p51_p7, %s2138_s22, %s53_s14  }
  0xc4   : > { %s1486_s30 = sshll.u32 %s400_s16, 3  ;;  %s1487_s5 = sshll.u32 %s2154_s26, 1 }
  0xc5   : > { %s409_s8 = sadd.s32 %s2150_s25, %s1487_s5  ;;  %s404_s3 = scalar_lea.vmem [#allocation5], %s1486_s30 }
  0xc6   : > { %s413_s13 = sshll.u32 %s404_s3, 4  ;;  %s1488_s20 = sshll.u32 %s409_s8, 7  ;;  %s2531_s13 = int_to_ptr.vmem [resolvable:$true] %s413_s13 }
  0xc7   : > { %s2536_s15 = scalar_lea.hbm %s2803_s0, %s1488_s20  ;;  %p2878_p0 = scmp.lt.s32.totalorder %s2158_s27, 4 }
  0xc8   : > { %s2880_s5 = sshll.u32 %s2154_s26, 7  ;;  %s2881_s9 = sld [smem:[#allocation32_spill]] }
  0xc9   : > { %p2542_p8 = pnand %p2878_p0, %p2495_p11  ;;  %s442_s20 = scalar_lea.vmem [#allocation10], %s2387_s10 }
  0xca   : > { %s449_s23 = sshll.u32 %s442_s20, 4  ;;  %s401_s6 = scalar_lea.sflag [#allocation6], %s400_s16  ;;  %s2554_s23 = int_to_ptr.vmem [resolvable:$true] %s449_s23 }
  0xcb   : > { %s1964_s11 = scalar_lea.hbm %s2536_s15, 128  ;;  %p1966_p11 = pneg %p2542_p8 }
  0xcc   : > { %p1965_p5 = scmp.ne.s32.totalorder %s2536_s15, %s1964_s11  ;;  %s1969_s3 = scalar_lea.hbm %s2803_s0, 512 }
  0xcd   : > { %p1970_p13 = scmp.lt.u32.totalorder %s2536_s15, %s2803_s0  ;;  %p1971_p2 = scmp.lt.u32.totalorder %s1969_s3, %s1964_s11 }
  0xce   : > { %s2551_s12 = scalar_lea.hbm %s2881_s9, %s2880_s5  ;;  %p1967_p4 = pnand %p1966_p11, %p1965_p5 }
  0xcf   : > { %p1972_p1 = por %p1971_p2, %p1970_p13  ;;  %p1973_p7 = scmp.lt.u32.totalorder %s1964_s11, %s2536_s15 }
  0xd0   : > { %p1968_p10 = pneg %p1967_p4 }
  0xd1   : > { %p1974_p0 = por %p1973_p7, %p1972_p1 }
  0xd3   : > { %p1975_p9 = pnand %p1974_p0, %p1968_p10 }
  0xd5   : > { %1978 = shalt.err (!%p1975_p9)
}
  0xd6   : > { %s1979_s10 = scalar_lea.vmem %s2531_s13, 128  ;;  %s2167_s16 = smov [#allocation5]  }
  0xd7   : > { %p1980_p5 = scmp.ne.s32.totalorder %s2531_s13, %s1979_s10  ;;  %s1984_s20 = sshll.u32 %s2167_s16, 4  ;;  %s1985_s20 = int_to_ptr.vmem [resolvable:$false] %s1984_s20 }
  0xd8   : > { %s1986_s1 = scalar_lea.vmem %s1985_s20, 256  ;;  %p1987_p3 = scmp.lt.s32.totalorder %s2531_s13, %s1985_s20 }
  0xd9   : > { %p1982_p4 = pnand %p1980_p5, %p1966_p11  ;;  %p1988_p13 = scmp.lt.s32.totalorder %s1986_s1, %s1979_s10 }
  0xdb   : > { %p1983_p6 = pneg %p1982_p4  ;;  %p1989_p2 = por %p1988_p13, %p1987_p3 }
  0xdd   : > { %p1990_p1 = pnand %p1989_p2, %p1983_p6 }
  0xdf   : > { %1993 = shalt.err (!%p1990_p1)
}
  0xe0   : > { %1678 = dma.hbm_to_vmem [thread:$0]  (!%p2542_p8), %s2536_s15, 128, %s2531_s13, %s401_s6  }
  0xe1   : > { %s1994_s11 = scalar_lea.hbm %s2551_s12, 128  ;;  %p2882_p11 = pneg %p2400_p12 }
  0xe2   : > { %p1995_p9 = scmp.ne.s32.totalorder %s2551_s12, %s1994_s11  ;;  %s1999_s8 = scalar_lea.hbm %s2881_s9, 256 }
  0xe3   : > { %p2000_p3 = scmp.lt.u32.totalorder %s2551_s12, %s2881_s9  ;;  %p2001_p6 = scmp.lt.u32.totalorder %s1999_s8, %s1994_s11 }
  0xe4   : > { %p1997_p10 = pnand %p1995_p9, %p2882_p11  ;;  %p2003_p5 = scmp.lt.u32.totalorder %s1994_s11, %s2551_s12 }
  0xe5   : > { %p2002_p0 = por %p2001_p6, %p2000_p3 }
  0xe6   : > { %p1998_p7 = pneg %p1997_p10 }
  0xe7   : > { %p2004_p4 = por %p2003_p5, %p2002_p0 }
  0xe9   : > { %p2005_p13 = pnand %p2004_p4, %p1998_p7 }
  0xeb   : > { %2008 = shalt.err (!%p2005_p13)
}
  0xec   : > { %s2009_s13 = scalar_lea.vmem %s2554_s23, 128  ;;  %p2883_p2 = pmov %p2882_p11 }
  0xed   : > { %p2010_p8 = scmp.ne.s32.totalorder %s2554_s23, %s2009_s13  ;;  %s2168_s15 = smov [#allocation10]  }
  0xee   : > { %s2014_s6 = sshll.u32 %s2168_s15, 4  ;;  %s2015_s6 = int_to_ptr.vmem [resolvable:$false] %s2014_s6 }
  0xef   : > { %p2012_p1 = pnand %p2010_p8, %p2883_p2  ;;  %s2016_s10 = scalar_lea.vmem %s2015_s6, 256 }
  0xf0   : > { %p2017_p11 = scmp.lt.s32.totalorder %s2554_s23, %s2015_s6  ;;  %p2018_p10 = scmp.lt.s32.totalorder %s2016_s10, %s2009_s13 }
  0xf1   : > { %p2013_p9 = pneg %p2012_p1 }
  0xf2   : > { %p2019_p3 = por %p2018_p10, %p2017_p11 }
  0xf4   : > { %p2020_p6 = pnand %p2019_p3, %p2013_p9 }
  0xf6   : > { %2023 = shalt.err (!%p2020_p6)
}
  0xf7   : > { %1684 = dma.hbm_to_vmem [thread:$0]  (!%p2400_p12), %s2551_s12, 128, %s2554_s23, %s2407_s4  }
  0xf8   : > { %s2884_s16 = sld [smem:[#allocation26_spill]] }
  0xfe   : > { %p2885_p7 = scmp.ne.s32.totalorder %s2884_s16, 0 }
  0xff   : > { %s2608_s20 = sand.u32 (!%p2885_p7), 1, %s2134_s21   ;;  %p2886_p0 = scmp.ne.s32.totalorder (!%p2885_p7), %s2872_s17, 0 }
 0x100   : > { %458 = sbr.rel (%p2885_p7) target bundleno = 2078 (0x81e), region = 64  ;;  %s1494_s1 = sshll.u32 (!%p2885_p7), %s2608_s20, 3 }
 0x101   : > { %s461_s11 = scalar_lea.sflag (!%p2885_p7), [#allocation6], %s2608_s20  ;;  %s2612_s30 = scalar_lea.vmem (!%p2885_p7), [#allocation5], %s1494_s1 }
 0x107   : > { %2097 = dma.done.wait (%p2886_p0), %s461_s11, 128  }
 0x108   : > { %2099 = vsyncadd (%p2886_p0), %s461_s11, 4294967168  ;;  %s469_s2 = sand.u32 1, %s2299_s28   ;;  %s471_s4 = sand.u32 1, %s2122_s18  }
 0x109   : > { %s2620_s12 = sshll.u32 %s471_s4, 3  ;;  %s470_s23 = scalar_lea.sflag [#allocation9], %s469_s2 }
 0x10a   : > { %s473_s3 = scalar_lea.vmem [#allocation8], %s2620_s12  ;;  %p2887_p12 = scmp.ne.s32.totalorder %s2859_s29, 0 }
 0x10c   : > { %2101 = dma.done.wait (%p2887_p12), %s470_s23, 256  }
 0x10d   : > { %2103 = vsyncadd (%p2887_p12), %s470_s23, 4294967040  ;;  %s482_s8 = scalar_lea.vmem [#allocation10], %s2620_s12  ;;  %p2888_p5 = scmp.eq.s32.totalorder %s2299_s28, 0 }
 0x10f   : > { %2105 = dma.done.wait (%p2888_p5), [#allocation12], 1024   ;;  %p2889_p4 = pmov %p2888_p5 }
 0x111   : > { %2107 = vsyncadd (%p2889_p4), [#allocation12], 4294966272  ;;  %p2890_p13 = pmov %p2889_p4 }
 0x112   : > { %p2891_p8 = pmov %p2889_p4 }
 0x113   : > { %2109 = dma.done.wait (%p2890_p13), [#allocation15], 528  }
 0x114   : > { %2111 = vsyncadd (%p2891_p8), [#allocation15], 4294966768  ;;  %s2636_s17 = scalar_lea.vmem [#allocation17], %s1494_s1  ;;  %s2892_s5 = sld [smem:[#allocation24_spill]] }
 0x11a   : > { %p1502_p2 = scmp.ne.s32.totalorder %s2892_s5, 0 }
 0x11b   : > { %v554_v0 = vld [vmem:[#allocation13] sm:$0xff] (!%p1502_p2)  ;;  %v555_v1 = vld [vmem:[#allocation13 + $0x8] sm:$0xff] (!%p1502_p2)  ;;  %v2169_v3 = vmov (!%p1502_p2), 0.0   ;;  %v556_v6 = vld [vmem:[#allocation13 + $0x10] sm:$0xff] (!%p1502_p2)  ;;  %vm2170_vm0 = vmmov (!%p1502_p2), 0   ;;  %vm567_vm1 = vcmask (!%p1502_p2), 261120  }
 0x11c   : > { %551 = sbr.rel (%p1502_p2) target bundleno = 633 (0x279), region = 96  ;;  %v613_v2 = vld [vmem:[#allocation14] sm:$0xff] (!%p1502_p2)  ;;  %1558 = vmatprep.subr.bf16.mxu0 (!%p1502_p2), %v2169_v3  ;;  %v558_v4 = vpack.c.bf16 (!%p1502_p2), %v555_v1, %v554_v0  ;;  %1566 = vmatprep.subr.bf16.mxu1 (!%p1502_p2), %v2169_v3  ;;  %v614_v5 = vld [vmem:[#allocation14 + $0x8] sm:$0xff] (!%p1502_p2)  ;;  %v557_v7 = vld [vmem:[#allocation13 + $0x18] sm:$0xff] (!%p1502_p2)  ;;  %s2893_s14 = sld [smem:[#allocation36_spill]] (!%p1502_p2)  ;;  %vm670_vm2 = vcmask (!%p1502_p2), 60416  }
 0x11d   : > { %v617_v8 = vpack.c.bf16 (!%p1502_p2), %v614_v5, %v613_v2  ;;  %v615_v9 = vld [vmem:[#allocation14 + $0x10] sm:$0xff] (!%p1502_p2)  ;;  %v616_v10 = vld [vmem:[#allocation14 + $0x18] sm:$0xff] (!%p1502_p2)  ;;  %1562 = vmatprep.mubr.msk.bf16.mxu0 (!%p1502_p2), %vm2170_vm0, %v2169_v3  ;;  %1570 = vmatprep.mubr.msk.bf16.mxu1 (!%p1502_p2), %vm2170_vm0, %v2169_v3  ;;  %v559_v11 = vpack.c.bf16 (!%p1502_p2), %v557_v7, %v556_v6  ;;  %v552_v12 = vld [vmem:[%s473_s3] sm:$0xff] (!%p1502_p2)  ;;  %s2171_s13 = smov (!%p1502_p2), 112   ;;  %s2172_s15 = smov (!%p1502_p2), 120  }
 0x11e   : > { %1559 = vmatpush3.bf16.msra.mxu0 (!%p1502_p2), %v558_v4  ;;  %v618_v13 = vpack.c.bf16 (!%p1502_p2), %v616_v10, %v615_v9  ;;  %v611_v14 = vld [vmem:[%s482_s8] sm:$0xff] (!%p1502_p2)  ;;  %v553_v15 = vpack.c.bf16 (!%p1502_p2), %v552_v12, %v552_v12  ;;  %v1505_v18 = vld [vmem:[#allocation16] ss:$0 sm:$0xff] (!%p1502_p2)  ;;  %s2173_s6 = smov (!%p1502_p2), 104  }
 0x11f   : > { %1567 = vmatpush3.bf16.msra.mxu1 (!%p1502_p2), %v617_v8  ;;  %1560 = vmatprep.subr.bf16.mxu0 (!%p1502_p2), %v2169_v3  ;;  %v612_v16 = vpack.c.bf16 (!%p1502_p2), %v611_v14, %v611_v14 }
 0x120   : > { %1568 = vmatprep.subr.bf16.mxu1 (!%p1502_p2), %v2169_v3 }
 0x122   : > { %1561 = vmatpush3.bf16.msra.mxu0 (!%p1502_p2), %v559_v11  ;;  %v1503_v17 = vld [vmem:[%s2893_s14] ss:$0 sm:$0xff] (!%p1502_p2) }
 0x123   : > { %1569 = vmatpush3.bf16.msra.mxu1 %v618_v13 }
 0x125   : > { %1563 = vmatmul.mubr.msk.bf16.vlgmr.msra.gmra.mrb[0].mxu0 %vm567_vm1, %v553_v15 }
 0x126   : > { %1571 = vmatmul.mubr.msk.bf16.vlgmr.msra.gmra.mrb[0].mxu1 %vm567_vm1, %v612_v16 }
 0x1f8   : > { %v605_v19 = vpop.f32.mrb[0].mxu0 }
 0x1f9   : > { %v606_v20 = vadd.f32 %v1503_v17, %v605_v19  ;;  %v1564_v21 = vpop.f32.mrb[1].mxu0  ;;  %v663_v22 = vpop.f32.mrb[0].mxu1 }
 0x1fa   : > { %v664_v23 = vadd.f32 %v1505_v18, %v663_v22  ;;  %v608_v24 = vpop.f32.mrb[2].mxu0  ;;  %v1572_v25 = vpop.f32.mrb[1].mxu1 }
 0x1fb   : > { %v669_v26 = vpack.c.bf16 %v606_v20, %v606_v20  ;;  %v1565_v27 = vpop.f32.mrb[3].mxu0  ;;  %v666_v28 = vpop.f32.mrb[2].mxu1 }
 0x1fc   : > { %v672_v29 = vpack.c.bf16 %v664_v23, %v664_v23  ;;  %v1573_v30 = vpop.f32.mrb[3].mxu1 }
 0x1fd   : > { %671 = vst.msk [vmem:[#allocation3] sm:$0xf] %vm670_vm2, %v669_v26  ;;  %690 = vrot.lane.b32.xlu1 %v669_v26, %s2171_s13  ;;  %677 = vrot.lane.b32.xlu0 %v669_v26, %s2172_s15 }
 0x1fe   : > { %673 = vst.msk [vmem:[#allocation4] sm:$0xf] %vm670_vm2, %v672_v29 }
 0x201   : > { %695 = vrot.lane.b32.xlu1 %v672_v29, %s2171_s13  ;;  %685 = vrot.lane.b32.xlu0 %v672_v29, %s2172_s15 }
 0x205   : > { %705 = vrot.lane.b32.xlu1 %v672_v29, %s2173_s6  ;;  %700 = vrot.lane.b32.xlu0 %v669_v26, %s2173_s6 }
 0x26f   : > { %v691_v31 = vpop.permute.xlu1 %690  ;;  %v678_v32 = vpop.permute.xlu0 %677 }
 0x270   : > { %694 = vst.msk [vmem:[#allocation3 + $0x8] sm:$0xf] %vm670_vm2, %v691_v31  ;;  %681 = vst.msk [vmem:[#allocation3 + $0x4] sm:$0xf] %vm670_vm2, %v678_v32 }
 0x273   : > { %v696_v33 = vpop.permute.xlu1 %695  ;;  %v686_v34 = vpop.permute.xlu0 %685 }
 0x274   : > { %699 = vst.msk [vmem:[#allocation4 + $0x8] sm:$0xf] %vm670_vm2, %v696_v33  ;;  %689 = vst.msk [vmem:[#allocation4 + $0x4] sm:$0xf] %vm670_vm2, %v686_v34 }
 0x277   : > { %v706_v35 = vpop.permute.xlu1 %705  ;;  %v701_v36 = vpop.permute.xlu0 %700 }
 0x278   : > { %709 = vst.msk [vmem:[#allocation4 + $0xc] sm:$0xf] %vm670_vm2, %v706_v35  ;;  %704 = vst.msk [vmem:[#allocation3 + $0xc] sm:$0xf] %vm670_vm2, %v701_v36 }
 0x279 PF: > { %v712_v37 = vld [vmem:[#allocation11] sm:$0xff]  ;;  %v713_v38 = vld [vmem:[#allocation11 + $0x8] sm:$0xff]  ;;  %v714_v39 = vld [vmem:[#allocation11 + $0x10] sm:$0xff]  ;;  %v2174_v40 = vmov 0.0   ;;  %vm2175_vm3 = vmmov 0   ;;  %vm725_vm4 = vcmask 261120  }
 0x27a   : > { %1574 = vmatprep.subr.bf16.mxu0 %v2174_v40  ;;  %v716_v41 = vpack.c.bf16 %v713_v38, %v712_v37  ;;  %v715_v42 = vld [vmem:[#allocation11 + $0x18] sm:$0xff]  ;;  %1578 = vmatprep.mubr.msk.bf16.mxu0 %vm2175_vm3, %v2174_v40  ;;  %v795_v46 = vld [vmem:[#allocation3] sm:$0xf]  ;;  %vm799_vm5 = vcmask 64512   ;;  %v796_v48 = vld [vmem:[#allocation3 + $0x4] sm:$0xf] }
 0x27b   : > { %1582 = vmatprep.subr.bf16.mxu1 %v2174_v40  ;;  %1584 = vmatprep.mubr.msk.bf16.mxu1 %vm2175_vm3, %v2174_v40  ;;  %v717_v43 = vpack.c.bf16 %v715_v42, %v714_v39  ;;  %v710_v44 = vld [vmem:[%s2612_s30] sm:$0xff]  ;;  %v804_v47 = vsel %vm799_vm5, %v795_v46, 0  ;;  %v850_v49 = vsel %vm799_vm5, %v796_v48, 0  ;;  %s2894_s1 = sld [smem:[#allocation34_spill]]  ;;  %vm771_vm6 = vcmask 60416   ;;  %s2176_s11 = smov 104  }
 0x27c   : > { %1575 = vmatpush3.bf16.msra.mxu0 %v716_v41  ;;  %v711_v45 = vpack.c.bf16 %v710_v44, %v710_v44  ;;  %1583 = vmatpush3.bf16.xpose.msra.mxu1 %v804_v47  ;;  %s2177_s30 = smov 120   ;;  %v797_v58 = vld [vmem:[#allocation3 + $0x8] sm:$0xf]  ;;  %s2178_s2 = smov 112   ;;  %v1032_v30 = vld [vmem:[#allocation4] sm:$0xf] }
 0x27d   : > { %1576 = vmatprep.subr.bf16.mxu0 %v2174_v40  ;;  %1594 = vmatprep.subr.bf16.mxu1 %v2174_v40  ;;  %v896_v59 = vsel %vm799_vm5, %v797_v58, 0  ;;  %vm1039_vm7 = vcmask 1043456   ;;  %v1033_v48 = vld [vmem:[#allocation4 + $0x4] sm:$0xf]  ;;  %s2895_s23 = sld [smem:[#allocation39_spill]]  ;;  %s2179_s15 = smov 8  }
 0x27e   : > { %v1041_v31 = vsel %vm1039_vm7, %v1032_v30, 0  ;;  %s2180_s6 = smov 16   ;;  %s2897_s10 = sld [smem:[#allocation25_spill]]  ;;  %vm1234_vm8 = vcmask 130048   ;;  %vm1236_vm9 = vcmask 195584  }
 0x27f   : > { %v798_v0 = vld [vmem:[#allocation3 + $0xc] sm:$0xf]  ;;  %s2181_s16 = smov 24   ;;  %s1312_s5 = sshll.u32 %s2636_s17, 4  ;;  %s2740_s5 = int_to_ptr.vmem [resolvable:$true] %s1312_s5 }
 0x280   : > { %1577 = vmatpush3.bf16.msra.mxu0 %v717_v43  ;;  %v942_v1 = vsel %vm799_vm5, %v798_v0, 0  ;;  %s2901_s14 = sld [smem:[#allocation41_spill]] }
 0x281   : > { %1588 = vmatprep.subr.bf16.mxu0 %v2174_v40  ;;  %v1509_v50 = vld [vmem:[%s2894_s1] ss:$0 sm:$0xff]  ;;  %s2898_s1 = sld [smem:[#allocation24_spill]] }
 0x283   : > { %1579 = vmatmul.mubr.msk.bf16.vlgmr.msra.gmra.mrb[0].mxu0 %vm725_vm4, %v711_v45  ;;  %s2896_s3 = smov %s2895_s23 }
 0x284   : > { %1590 = vmatprep.mubr.msk.bf16.mxu0 %vm2175_vm3, %v2174_v40 }
 0x289   : > { %1589 = vmatpush3.bf16.xpose.msra.mxu0 %v850_v49  ;;  %v1087_v49 = vsel %vm1039_vm7, %v1033_v48, 0 }
 0x28a   : > { %1600 = vmatprep.subr.bf16.mxu0 %v2174_v40 }
 0x356   : > { %v763_v51 = vpop.f32.mrb[0].mxu0 }
 0x357   : > { %v764_v52 = vadd.f32 %v1509_v50, %v763_v51  ;;  %v1580_v53 = vpop.f32.mrb[1].mxu0 }
 0x358   : > { %v766_v54 = vpop.f32.mrb[2].mxu0 }
 0x359   : > { %v769_v55 = vmul.f32 0.35355338, %v764_v52  ;;  %v1581_v56 = vpop.f32.mrb[3].mxu0  ;;  %v1034_v52 = vld [vmem:[#allocation4 + $0x8] sm:$0xf] }
 0x35b   : > { %v770_v57 = vpack.c.bf16 %v769_v55, %v769_v55  ;;  %v1133_v55 = vsel %vm1039_vm7, %v1034_v52, 0 }
 0x35d   : > { %772 = vst.msk [vmem:[#allocation2] sm:$0xf] %vm771_vm6, %v770_v57  ;;  %786 = vrot.lane.b32.xlu1 %v770_v57, %s2176_s11  ;;  %776 = vrot.lane.b32.xlu0 %v770_v57, %s2177_s30  ;;  %s1523_s11 = sshll.u32 %s2897_s10, 1  ;;  %s2899_s30 = sld [smem:[#allocation29_spill]] }
 0x35e   : > { %s2182_s10 = smov [#allocation17]  }
 0x361   : > { %781 = vrot.lane.b32.xlu0 %v770_v57, %s2178_s2  ;;  %s1308_s2 = sadd.s32 %s2898_s1, %s1523_s11 }
 0x362   : > { %s1524_s8 = sshll.u32 %s1308_s2, 7 }
 0x363   : > { %s2738_s13 = scalar_lea.hbm %s2901_s14, %s1524_s8  ;;  %p2902_p9 = scmp.ne.s32.totalorder %s2899_s30, 0 }
 0x364   : > { %v791_v60 = vld [vmem:[#allocation2] sm:$0xf] }
 0x365   : > { %1585 = vmatmul.mubr.msk.bf16.vlgmr.msra.gmra.mrb[0].mxu1 %vm799_vm5, %v791_v60  ;;  %v1035_v60 = vld [vmem:[#allocation4 + $0xc] sm:$0xf] }
 0x366   : > { %1595 = vmatpush3.bf16.xpose.msra.mxu1 %v896_v59  ;;  %1596 = vmatprep.mubr.msk.bf16.mxu1 %vm2175_vm3, %v2174_v40 }
 0x367   : > { %1606 = vmatprep.subr.bf16.mxu1 %v2174_v40 }
 0x3cf   : > { %v787_v61 = vpop.permute.xlu1 %786  ;;  %v777_v62 = vpop.permute.xlu0 %776 }
 0x3d0   : > { %790 = vst.msk [vmem:[#allocation2 + $0xc] sm:$0xf] %vm771_vm6, %v787_v61  ;;  %780 = vst.msk [vmem:[#allocation2 + $0x4] sm:$0xf] %vm771_vm6, %v777_v62 }
 0x3d3   : > { %v782_v63 = vpop.permute.xlu0 %781 }
 0x3d4   : > { %785 = vst.msk [vmem:[#allocation2 + $0x8] sm:$0xf] %vm771_vm6, %v782_v63  ;;  %v1179_v63 = vsel %vm1039_vm7, %v1035_v60, 0 }
 0x3d7   : > { %v792_v2 = vld [vmem:[#allocation2 + $0x4] sm:$0xf]  ;;  %v794_v4 = vld [vmem:[#allocation2 + $0xc] sm:$0xf] }
 0x3d8   : > { %1591 = vmatmul.mubr.msk.bf16.vlgmr.msra.gmra.mrb[4].mxu0 %vm799_vm5, %v792_v2 }
 0x3d9   : > { %1601 = vmatpush3.bf16.xpose.msra.mxu0 %v942_v1  ;;  %1602 = vmatprep.mubr.msk.bf16.mxu0 %vm2175_vm3, %v2174_v40 }
 0x3da   : > { %1612 = vmatprep.subr.bf16.mxu0 %v2174_v40 }
 0x3db   : > { %v793_v3 = vld [vmem:[#allocation2 + $0x8] sm:$0xf] }
 0x3dc   : > { %1597 = vmatmul.mubr.msk.bf16.vlgmr.msra.gmra.mrb[4].mxu1 %vm799_vm5, %v793_v3 }
 0x3dd   : > { %1608 = vmatprep.mubr.msk.bf16.mxu1 %vm2175_vm3, %v2174_v40  ;;  %1607 = vmatpush3.bf16.msra.mxu1 %v1041_v31 }
 0x3de   : > { %1618 = vmatprep.subr.bf16.mxu1 %v2174_v40 }
 0x3e0   : > { %1603 = vmatmul.mubr.msk.bf16.vlgmr.msra.gmra.mrb[8].mxu0 %vm799_vm5, %v794_v4 }
 0x3e1   : > { %1614 = vmatprep.mubr.msk.bf16.mxu0 %vm2175_vm3, %v2174_v40  ;;  %1613 = vmatpush3.bf16.msra.mxu0 %v1087_v49 }
 0x3e2   : > { %1624 = vmatprep.subr.bf16.mxu0 %v2174_v40 }
 0x438   : > { %v840_v5 = vpop.f32.mrb[0].mxu1 }
 0x439   : > { %v1586_v6 = vpop.f32.mrb[1].mxu1  ;;  %v984_v7 = vsel %vm799_vm5, %v840_v5, -inf }
 0x43a   : > { %985 = vmax.xlane.f32.xlu1 %v984_v7  ;;  %v843_v8 = vpop.f32.mrb[2].mxu1 }
 0x43b   : > { %v1587_v9 = vpop.f32.mrb[3].mxu1 }
 0x4ab   : > { %v886_v10 = vpop.f32.mrb[4].mxu0 }
 0x4ac   : > { %v1592_v11 = vpop.f32.mrb[5].mxu0  ;;  %v987_v12 = vsel %vm799_vm5, %v886_v10, -inf }
 0x4ad   : > { %988 = vmax.xlane.f32.xlu0 %v987_v12  ;;  %v889_v13 = vpop.f32.mrb[6].mxu0  ;;  %v1240_v11 = vld [vmem:[%s2896_s3 + $0x8] sm:$0xff] }
 0x4ae   : > { %v1593_v14 = vpop.f32.mrb[7].mxu0  ;;  %v1241_v13 = vld [vmem:[%s2896_s3 + $0x10] sm:$0xff] }
 0x4af   : > { %v932_v15 = vpop.f32.mrb[4].mxu1  ;;  %v1242_v14 = vld [vmem:[%s2896_s3 + $0x18] sm:$0xff] }
 0x4b0   : > { %v1598_v16 = vpop.f32.mrb[5].mxu1  ;;  %v990_v17 = vsel %vm799_vm5, %v932_v15, -inf }
 0x4b1   : > { %v935_v18 = vpop.f32.mrb[6].mxu1  ;;  %991 = vmax.xlane.f32.xlu0 %v990_v17 }
 0x4b2   : > { %v1599_v19 = vpop.f32.mrb[7].mxu1 }
 0x4b3   : > { %v978_v20 = vpop.f32.mrb[8].mxu0 }
 0x4b4   : > { %v1604_v21 = vpop.f32.mrb[9].mxu0  ;;  %v993_v22 = vsel %vm799_vm5, %v978_v20, -inf }
 0x4b5   : > { %994 = vmax.xlane.f32.xlu1 %v993_v22  ;;  %v981_v23 = vpop.f32.mrb[10].mxu0 }
 0x4b6   : > { %v1605_v24 = vpop.f32.mrb[11].mxu0 }
 0x4c7   : > { %v986_v25 = vpop.xlane.xlu1 %985 }
 0x4c8   : > { %v996_v26 = vsub.f32 %v840_v5, %v986_v25 }
 0x4ca   : > { %v1000_v27 = vmul.f32 1.442695, %v996_v26 }
 0x4cc   : > { %1806 = vpow2.f32 %v1000_v27 }
 0x4d6   : > { %v1807_v28 = vpop.eup %1806 }
 0x4d7   : > { %v1008_v29 = vsel %vm799_vm5, %v1807_v28, 0.0 }
 0x4d8   : > { %1009 = vadd.xlane.f32.xlu0 %v1008_v29 }
 0x53a   : > { %v989_v32 = vpop.xlane.xlu0 %988 }
 0x53b   : > { %v997_v33 = vsub.f32 %v886_v10, %v989_v32  ;;  %v1239_v10 = vld [vmem:[%s2895_s23] sm:$0xff]  ;;  %s2900_s23 = sld [smem:[#allocation40_spill]] }
 0x53c   : > { %v1243_v12 = vpack.c.bf16 %v1240_v11, %v1239_v10 }
 0x53d   : > { %v1002_v34 = vmul.f32 1.442695, %v997_v33 }
 0x53e   : > { %v992_v35 = vpop.xlane.xlu0 %991 }
 0x53f   : > { %1808 = vpow2.f32 %v1002_v34  ;;  %v998_v36 = vsub.f32 %v932_v15, %v992_v35  ;;  %v1244_v15 = vpack.c.bf16 %v1242_v14, %v1241_v13 }
 0x541   : > { %v1004_v37 = vmul.f32 1.442695, %v998_v36  ;;  %v1520_v34 = vld [vmem:[%s2900_s23] ss:$0 sm:$0xff] }
 0x542   : > { %v995_v38 = vpop.xlane.xlu1 %994 }
 0x543   : > { %1810 = vpow2.f32 %v1004_v37  ;;  %v999_v39 = vsub.f32 %v978_v20, %v995_v38 }
 0x545   : > { %v1006_v41 = vmul.f32 1.442695, %v999_v39 }
 0x547   : > { %1812 = vpow2.f32 %v1006_v41 }
 0x549   : > { %v1809_v42 = vpop.eup %1808 }
 0x54a   : > { %v1011_v43 = vsel %vm799_vm5, %v1809_v42, 0.0 }
 0x54b   : > { %1012 = vadd.xlane.f32.xlu1 %v1011_v43 }
 0x54d   : > { %v1811_v44 = vpop.eup %1810 }
 0x54e   : > { %v1014_v45 = vsel %vm799_vm5, %v1811_v44, 0.0 }
 0x54f   : > { %1015 = vadd.xlane.f32.xlu0 %v1014_v45 }
 0x551   : > { %v1813_v46 = vpop.eup %1812 }
 0x552   : > { %v1017_v47 = vsel %vm799_vm5, %v1813_v46, 0.0 }
 0x553   : > { %1018 = vadd.xlane.f32.xlu1 %v1017_v47 }
 0x565   : > { %v1010_v50 = vpop.xlane.xlu0 %1009 }
 0x566   : > { %1814 = vrcp.f32 %v1010_v50 }
 0x570   : > { %v1815_v51 = vpop.eup %1814 }
 0x571   : > { %v1024_v53 = vmul.f32 %v1815_v51, %v1807_v28 }
 0x573   : > { %v1028_v54 = vpack.c.bf16 %v1024_v53, %v1024_v53 }
 0x575   : > { %1609 = vmatmul.mubr.msk.bf16.vlgmr.msra.gmra.mrb[8].mxu1 %vm799_vm5, %v1028_v54 }
 0x576   : > { %1619 = vmatpush3.bf16.msra.mxu1 %v1133_v55  ;;  %1620 = vmatprep.mubr.msk.bf16.mxu1 %vm2175_vm3, %v2174_v40 }
 0x577   : > { %1630 = vmatprep.subr.bf16.mxu1 %v2174_v40 }
 0x5d8   : > { %v1013_v56 = vpop.xlane.xlu1 %1012 }
 0x5d9   : > { %1816 = vrcp.f32 %v1013_v56 }
 0x5dc   : > { %v1016_v57 = vpop.xlane.xlu0 %1015 }
 0x5dd   : > { %1818 = vrcp.f32 %v1016_v57 }
 0x5e0   : > { %v1019_v58 = vpop.xlane.xlu1 %1018 }
 0x5e1   : > { %1820 = vrcp.f32 %v1019_v58 }
 0x5e3   : > { %v1817_v59 = vpop.eup %1816 }
 0x5e4   : > { %v1025_v61 = vmul.f32 %v1817_v59, %v1809_v42 }
 0x5e6   : > { %v1029_v62 = vpack.c.bf16 %v1025_v61, %v1025_v61 }
 0x5e7   : > { %v1819_v0 = vpop.eup %1818 }
 0x5e8   : > { %v1026_v1 = vmul.f32 %v1819_v0, %v1811_v44  ;;  %1615 = vmatmul.mubr.msk.bf16.vlgmr.msra.gmra.mrb[12].mxu0 %vm799_vm5, %v1029_v62 }
 0x5e9   : > { %1625 = vmatpush3.bf16.msra.mxu0 %v1179_v63  ;;  %1626 = vmatprep.mubr.msk.bf16.mxu0 %vm2175_vm3, %v2174_v40 }
 0x5ea   : > { %v1030_v2 = vpack.c.bf16 %v1026_v1, %v1026_v1 }
 0x5eb   : > { %v1821_v3 = vpop.eup %1820 }
 0x5ec   : > { %v1027_v4 = vmul.f32 %v1821_v3, %v1813_v46  ;;  %1621 = vmatmul.mubr.msk.bf16.vlgmr.msra.gmra.mrb[12].mxu1 %vm799_vm5, %v1030_v2 }
 0x5ed   : > { %1634 = vmatprep.mubr.msk.bf16.mxu1 %vm2175_vm3, %v2174_v40  ;;  %1631 = vmatpush3.bf16.msra.mxu1 %v1243_v12 }
 0x5ee   : > { %v1031_v5 = vpack.c.bf16 %v1027_v4, %v1027_v4  ;;  %1632 = vmatprep.subr.bf16.mxu1 %v2174_v40 }
 0x5f0   : > { %1627 = vmatmul.mubr.msk.bf16.vlgmr.msra.gmra.mrb[16].mxu0 %vm799_vm5, %v1031_v5 }
 0x5f1   : > { %1633 = vmatpush3.bf16.msra.mxu1 %v1244_v15 }
 0x648   : > { %v1077_v6 = vpop.f32.mrb[8].mxu1 }
 0x649   : > { %v1610_v7 = vpop.f32.mrb[9].mxu1 }
 0x64a   : > { %v1080_v8 = vpop.f32.mrb[10].mxu1 }
 0x64b   : > { %v1611_v9 = vpop.f32.mrb[11].mxu1 }
 0x6bb   : > { %v1123_v16 = vpop.f32.mrb[12].mxu0 }
 0x6bc   : > { %1222 = vrot.lane.b32.xlu0 %v1123_v16, %s2179_s15  ;;  %v1616_v17 = vpop.f32.mrb[13].mxu0  ;;  %s1297_s15 = scalar_lea.sflag [#allocation7], %s2608_s20 }
 0x6bd   : > { %v1126_v18 = vpop.f32.mrb[14].mxu0 }
 0x6be   : > { %v1617_v19 = vpop.f32.mrb[15].mxu0 }
 0x6bf   : > { %v1169_v20 = vpop.f32.mrb[12].mxu1 }
 0x6c0   : > { %v1622_v21 = vpop.f32.mrb[13].mxu1  ;;  %1226 = vrot.lane.b32.xlu1 %v1169_v20, %s2180_s6  ;;  %s2024_s6 = scalar_lea.vmem %s2740_s5, 128 }
 0x6c1   : > { %v1172_v40 = vpop.f32.mrb[14].mxu1  ;;  %p2025_p1 = scmp.ne.s32.totalorder %s2740_s5, %s2024_s6 }
 0x6c2   : > { %v1623_v22 = vpop.f32.mrb[15].mxu1 }
 0x6c3   : > { %v1215_v23 = vpop.f32.mrb[16].mxu0  ;;  %p2026_p11 = pnand %p2025_p1, %p2902_p9 }
 0x6c4   : > { %1230 = vrot.lane.b32.xlu1 %v1215_v23, %s2181_s16  ;;  %v1628_v24 = vpop.f32.mrb[17].mxu0  ;;  %s2028_s16 = sshll.u32 %s2182_s10, 4  ;;  %s2029_s16 = int_to_ptr.vmem [resolvable:$false] %s2028_s16 }
 0x6c5   : > { %v1218_v25 = vpop.f32.mrb[18].mxu0  ;;  %p2027_p10 = pneg %p2026_p11  ;;  %s2030_s1 = scalar_lea.vmem %s2029_s16, 256 }
 0x6c6   : > { %v1629_v26 = vpop.f32.mrb[19].mxu0  ;;  %p2031_p3 = scmp.lt.s32.totalorder %s2740_s5, %s2029_s16  ;;  %p2032_p6 = scmp.lt.s32.totalorder %s2030_s1, %s2024_s6 }
 0x6c8   : > { %p2033_p7 = por %p2032_p6, %p2031_p3 }
 0x6ca   : > { %p2034_p0 = pnand %p2033_p7, %p2027_p10 }
 0x72e   : > { %v1223_v27 = vpop.permute.xlu0 %1222 }
 0x72f   : > { %v1233_v29 = vsel %vm799_vm5, %v1077_v6, %v1223_v27 }
 0x732   : > { %v1227_v28 = vpop.permute.xlu1 %1226 }
 0x733   : > { %v1235_v30 = vsel %vm1234_vm8, %v1233_v29, %v1227_v28 }
 0x736   : > { %v1231_v31 = vpop.permute.xlu1 %1230 }
 0x737   : > { %v1237_v32 = vsel %vm1236_vm9, %v1235_v30, %v1231_v31 }
 0x738   : > { %v1238_v33 = vpack.c.bf16 %v1237_v32, %v1237_v32 }
 0x73a   : > { %1635 = vmatmul.mubr.msk.bf16.vlgmr.msra.gmra.mrb[16].mxu1 %vm725_vm4, %v1238_v33 }
 0x80d   : > { %v1289_v35 = vpop.f32.mrb[16].mxu1 }
 0x80e   : > { %v1290_v36 = vadd.f32 %v1520_v34, %v1289_v35  ;;  %v1636_v37 = vpop.f32.mrb[17].mxu1 }
 0x80f   : > { %v1292_v38 = vpop.f32.mrb[18].mxu1 }
 0x810   : > { %1295 = vst.msk [vmem:[%s2636_s17] sm:$0xff] %vm725_vm4, %v1290_v36  ;;  %v1637_v39 = vpop.f32.mrb[19].mxu1 }
 0x811   : > { %2037 = shalt.err (!%p2034_p0)
}
 0x812   : > { %s2038_s20 = scalar_lea.hbm %s2738_s13, 128  ;;  %s2042_s2 = scalar_lea.hbm %s2901_s14, 512 }
 0x813   : > { %p2039_p12 = scmp.ne.s32.totalorder %s2738_s13, %s2038_s20  ;;  %p2043_p13 = scmp.lt.u32.totalorder %s2738_s13, %s2901_s14 }
 0x814   : > { %p2044_p8 = scmp.lt.u32.totalorder %s2042_s2, %s2038_s20  ;;  %p2046_p1 = scmp.lt.u32.totalorder %s2038_s20, %s2738_s13 }
 0x815   : > { %p2040_p5 = pnand %p2039_p12, %p2902_p9 }
 0x816   : > { %p2045_p2 = por %p2044_p8, %p2043_p13 }
 0x817   : > { %p2041_p4 = pneg %p2040_p5 }
 0x818   : > { %p2047_p11 = por %p2046_p1, %p2045_p2 }
 0x81a   : > { %p2048_p10 = pnand %p2047_p11, %p2041_p4 }
 0x81c   : > { %2051 = shalt.err (!%p2048_p10)
}
 0x81d   : > { %1660 = dma.vmem_to_hbm [thread:$0]  (%p2902_p9), %s2740_s5, 128, %s2738_s13, %s1297_s15  }
 0x81e PF: > { %s2903_s23 = sld [smem:[#allocation23_spill]]  ;;  %s2904_s8 = sld [smem:[#allocation30_spill]] }
 0x81f   : > { %p1698_p3 = scmp.ge.s32.totalorder %s2158_s27, 2 }
 0x824   : > { %s1324_s28 = sand.u32 1, %s2903_s23   ;;  %p2905_p6 = scmp.ne.s32.totalorder %s2904_s8, 0 }
 0x825   : > { %s1325_s29 = scalar_lea.sflag [#allocation7], %s1324_s28 }
 0x826   : > { %p1686_p7 = pnand %p1698_p3, %p2905_p6 }
 0x828   : > { %2113 = dma.done.wait (!%p1686_p7), %s1325_s29, 128  }
 0x829   : > { %2115 = vsyncadd (!%p1686_p7), %s1325_s29, 4294967168  ;;  %s32_s27 = sadd.s32 1, %s2158_s27   ;;  %s2906_s30 = sld [smem:[#allocation27_spill]] }
 0x82a   : > { %p29_p0 = scmp.ge.s32.totalorder %s32_s27, 6   ;;  %s2907_s5 = sld [smem:[#allocation28_spill]] }
 0x82b   : > { %s2908_s17 = smov %s2122_s18  ;;  %s2909_s18 = smov %s2126_s19 }
 0x82c   : > { %s2910_s19 = smov %s2524_s7  ;;  %s2911_s20 = smov %s2134_s21 }
 0x82d   : > { %s2912_s21 = smov %s2138_s22  ;;  %s2913_s22 = smov %s2527_s24 }
 0x82e   : > { %s2914_s23 = smov %s2150_s25  ;;  %s2915_s24 = smov %s2154_s26 }
 0x82f   : > { %s2916_s25 = smov %s2906_s30  ;;  %31 = sbr.rel (!%p29_p0) target bundleno = 25 (0x19), region = 162 }
 0x830   : > { %s2917_s26 = smov %s2907_s5 }
 0x836   :  { %1330 = vsyncpa [#allocation6], 1 }
 0x837   :  { %1332 = vsyncpa [#allocation6 + $0x1], 1 }
 0x838   :  { %1333 = vsyncpa [#allocation9], 1 }
 0x839   :  { %1335 = vsyncpa [#allocation9 + $0x1], 1 }
 0x83a   :  { %1336 = vsyncpa [#allocation12], 1 }
 0x83b   :  { %1337 = vsyncpa [#allocation15], 1 }
 0x83c   :  { %1338 = vsyncpa [#allocation7], 1 }
 0x83d   :  { %1340 = vsyncpa [#allocation7 + $0x1], 1 }

</bundles_post_ra>
